<compile_context>
chip_gen: v6e
topology: v6e:2x2x1
jax: 0.10.0
libtpu: 0.0.40
codegen_flags: <defaults>
</compile_context>

<pallas_src>
from functools import partial

import jax
import jax.numpy as jnp
from jax.experimental import pallas as pl
from jax.experimental.pallas import tpu as pltpu


def _spp_kernel(x_ref, w1_ref, b1_ref, w2_ref, b2_ref, m_ref, o_ref, *,
                width, single_cv2_dot):
    # x_ref:  (c1, lanes)      activations, batch folded into lanes (lanes % 128 == 0)
    # w1_ref: (c_, c1)         cv1 weight with BN folded in (mxu dtype)
    # b1_ref: (c_, 1)          cv1 folded bias (f32)
    # w2_ref: (c2, 4c_) or (4, c2, c_)   cv2 folded weight (mxu dtype)
    # b2_ref: (c2, 1)          cv2 folded bias (f32)
    # m_ref:  (8, lanes) f32   additive {0,-inf} pool edge masks (resident)
    # o_ref:  (c2, lanes)
    lanes = x_ref.shape[-1]
    c_ = w1_ref.shape[0]
    mxu_dt = w1_ref.dtype

    # --- hoisted edge masks: one broadcast each, reused by all three pools -------
    m_all = m_ref[...]
    m_r1, m_r2, m_l1, m_l2, m_d1, m_d2, m_u1, m_u2 = (
        jnp.broadcast_to(m_all[i:i + 1, :], (c_, lanes)) for i in range(8))

    def read_ahead(a, s):
        # out[:, j] = a[:, (j + s) mod lanes]  (wrap; caller masks edge/wrapped lanes)
        return pltpu.roll(a, (-s) % lanes, axis=1)

    def pool5(a):
        # 5x5, stride-1, 'same' (-inf padded) max pool on the flattened image.
        # Horizontal window (offsets +-1, +-2), masked so rows / images never mix.
        h = a
        h = jnp.maximum(h, jnp.maximum(read_ahead(a, 1) + m_r1,
                                       read_ahead(a, -1) + m_l1))
        h = jnp.maximum(h, jnp.maximum(read_ahead(a, 2) + m_r2,
                                       read_ahead(a, -2) + m_l2))
        # Vertical window: whole-row shifts, masked at the top/bottom image edges.
        v = h
        v = jnp.maximum(v, jnp.maximum(read_ahead(h, width) + m_d1,
                                       read_ahead(h, -width) + m_u1))
        v = jnp.maximum(v, jnp.maximum(read_ahead(h, 2 * width) + m_d2,
                                       read_ahead(h, -2 * width) + m_u2))
        return v

    # --- cv1: 1x1 conv (+ folded BN) + SiLU, f32 accumulate ----------------------
    x = x_ref[...].astype(mxu_dt)
    z1 = jnp.dot(w1_ref[...], x, preferred_element_type=jnp.float32) + b1_ref[...]
    y = z1 * jax.nn.sigmoid(z1)                       # (c_, lanes) f32

    # --- max pools k=5, 9, 13 (stride 1, same padding) via composed 5-pools ------
    p5 = pool5(y)
    p9 = pool5(p5)                                    # == maxpool k=9
    p13 = pool5(p9)                                   # == maxpool k=13

    # --- cv2 on the (virtually) concatenated features + folded BN + SiLU ---------
    if single_cv2_dot:
        cat = jnp.concatenate([y, p5, p9, p13], axis=0).astype(w2_ref.dtype)
        acc = jnp.dot(w2_ref[...], cat, preferred_element_type=jnp.float32)
    else:
        wdt = w2_ref.dtype
        acc = jnp.dot(w2_ref[0], y.astype(wdt), preferred_element_type=jnp.float32)
        acc = acc + jnp.dot(w2_ref[1], p5.astype(wdt), preferred_element_type=jnp.float32)
        acc = acc + jnp.dot(w2_ref[2], p9.astype(wdt), preferred_element_type=jnp.float32)
        acc = acc + jnp.dot(w2_ref[3], p13.astype(wdt), preferred_element_type=jnp.float32)
    z2 = acc + b2_ref[...]
    o_ref[...] = (z2 * jax.nn.sigmoid(z2)).astype(o_ref.dtype)


def _fold_bn(w, gamma, beta, mean, var, eps):
    """Fold eval-mode BatchNorm into a bias-free 1x1 conv weight (always in f32)."""
    w = w.astype(jnp.float32)
    inv = gamma.astype(jnp.float32) / jnp.sqrt(var.astype(jnp.float32) + eps)
    return w * inv[:, None], beta.astype(jnp.float32) - mean.astype(jnp.float32) * inv


def spp_forward(x, w1, bn1, w2, bn2, *, mxu_dtype=None, images_per_step=None):
    """SPP forward pass.

    x:   (N, c1, H, W)
    w1:  (c_, c1)     squeezed 1x1 conv weight of cv1 (c_ = c1 // 2)
    w2:  (c2, 4*c_)   squeezed 1x1 conv weight of cv2
    bn*: (gamma, beta, running_mean, running_var, eps)   eval-mode BN
    mxu_dtype: dtype for the MXU operands (e.g. jnp.bfloat16 for the fast path);
               defaults to x.dtype.
    """
    n, c1, hh, ww = x.shape
    c_ = w1.shape[0]
    c2 = w2.shape[0]
    hw = hh * ww
    hw_pad = ((hw + 127) // 128) * 128                # lane-dense blocks (mult. of 128)

    if mxu_dtype is None:
        mxu_dtype = x.dtype
    mxu_dtype = jnp.dtype(mxu_dtype)

    # Fold BN in f32, cast to the MXU dtype afterwards (keeps 1e-4 accuracy for f32).
    w1f, b1f = _fold_bn(w1, *bn1)                     # (c_, c1), (c_,)
    w2f, b2f = _fold_bn(w2, *bn2)                     # (c2, 4c_), (c2,)
    w1k = w1f.astype(mxu_dtype)

    single_cv2_dot = c_ < 128                         # tiny K: one dot on in-VMEM concat
    if single_cv2_dot:
        w2k = w2f.astype(mxu_dtype)                   # (c2, 4c_)
        w2_idx = lambda i: (0, 0)
    else:                                             # big K: 4 accumulated dots
        w2k = jnp.transpose(w2f.reshape(c2, 4, c_), (1, 0, 2)).astype(mxu_dtype)
        w2_idx = lambda i: (0, 0, 0)

    # Images per grid step: few fat lane-dense steps beat N tiny steps at small N*HW.
    # TODO(synk): add a halo-tiled (6-row) spatial grid axis for production H*W where
    # whole images exceed the per-step VMEM budget (mandatory on v7x's 64 MiB VMEM).
    if images_per_step is None:
        per_img = hw_pad * 4 * (c1 + c2 + 14 * c_)    # rough per-image VMEM footprint
        nb = 1
        for d in range(1, n + 1):
            if n % d == 0 and d * per_img <= (8 << 20):
                nb = d
    else:
        nb = images_per_step
    assert n % nb == 0, (n, nb)
    steps = n // nb
    lanes = nb * hw_pad

    # Fold batch into the lane axis: x -> (c1, N*HW_pad), zero-pad the tail lanes
    # (padded lanes never leak into valid pixels thanks to the pool edge masks, and
    # their cv2 outputs are sliced away below).
    x2 = jnp.transpose(x.reshape(n, c1, hw), (1, 0, 2))         # (c1, N, HW)
    if hw_pad != hw:
        x2 = jnp.pad(x2, ((0, 0), (0, 0), (0, hw_pad - hw)))
    x2 = x2.reshape(c1, n * hw_pad)

    # Additive {0,-inf} edge masks for the pool shifts: computed once here with plain
    # XLA (avoids in-kernel vector integer div/mod), resident across grid steps.
    col = jnp.arange(hw_pad, dtype=jnp.int32) % ww
    row = jnp.arange(hw_pad, dtype=jnp.int32) // ww
    amask = lambda c: jnp.where(c, 0.0, -jnp.inf).astype(jnp.float32)
    masks = jnp.stack([
        amask(col < ww - 1), amask(col < ww - 2),     # may receive from right by 1, 2
        amask(col >= 1), amask(col >= 2),             # may receive from left  by 1, 2
        amask(row < hh - 1), amask(row < hh - 2),     # may receive from below by 1, 2
        amask(row >= 1), amask(row >= 2),             # may receive from above by 1, 2
    ])
    masks = jnp.tile(masks, (1, nb))                  # (8, lanes)

    # Explicit VMEM budget (do not rely on defaults; v7x has 64 MiB per TensorCore).
    io_bytes = 2 * lanes * (x2.dtype.itemsize * c1 + jnp.dtype(x.dtype).itemsize * c2)
    feat_bytes = lanes * 4 * (6 * c_ + 2 * c2) + masks.size * 4 + lanes * 4 * 8 * c_
    w_bytes = 2 * (w1k.size + w2k.size) * mxu_dtype.itemsize
    vmem_limit = int(min(max(2 * (io_bytes + feat_bytes + w_bytes), 4 << 20), 48 << 20))

    out2 = pl.pallas_call(
        partial(_spp_kernel, width=ww, single_cv2_dot=single_cv2_dot),
        out_shape=jax.ShapeDtypeStruct((c2, n * hw_pad), x.dtype),
        grid_spec=pltpu.PrefetchScalarGridSpec(
            num_scalar_prefetch=0,
            grid=(steps,),
            in_specs=[
                pl.BlockSpec((c1, lanes), lambda i: (0, i)),    # activations per step
                pl.BlockSpec((c_, c1), lambda i: (0, 0)),       # resident folded weights
                pl.BlockSpec((c_, 1), lambda i: (0, 0)),
                pl.BlockSpec(w2k.shape, w2_idx),
                pl.BlockSpec((c2, 1), lambda i: (0, 0)),
                pl.BlockSpec((8, lanes), lambda i: (0, 0)),     # resident pool edge masks
            ],
            out_specs=pl.BlockSpec((c2, lanes), lambda i: (0, i)),
        ),
        compiler_params=pltpu.CompilerParams(
            dimension_semantics=("parallel",),
            vmem_limit_bytes=vmem_limit),
    )(x2, w1k, b1f.reshape(c_, 1), w2k, b2f.reshape(c2, 1), masks)

    out2 = out2.reshape(c2, n, hw_pad)[:, :, :hw]
    return jnp.transpose(out2, (1, 0, 2)).reshape(n, c2, hh, ww)


# ----------------------------- pure-JAX reference -----------------------------
def _conv_bn_silu_ref(x, w, bn):
    gamma, beta, mean, var, eps = bn
    z = jnp.einsum("oc,nchw->nohw", w, x)
    z = (z - mean[None, :, None, None]) * (
        gamma[None, :, None, None] / jnp.sqrt(var[None, :, None, None] + eps)
    ) + beta[None, :, None, None]
    return z * jax.nn.sigmoid(z)


def _maxpool_ref(x, k):
    p = k // 2
    return jax.lax.reduce_window(
        x, -jnp.inf, jax.lax.max,
        window_dimensions=(1, 1, k, k),
        window_strides=(1, 1, 1, 1),
        padding=((0, 0), (0, 0), (p, p), (p, p)))


def spp_reference(x, w1, bn1, w2, bn2):
    y = _conv_bn_silu_ref(x, w1, bn1)
    cat = jnp.concatenate([y] + [_maxpool_ref(y, k) for k in (5, 9, 13)], axis=1)
    return _conv_bn_silu_ref(cat, w2, bn2)


if __name__ == "__main__":
    key = jax.random.PRNGKey(0)
    ks = jax.random.split(key, 11)

    # Small shapes consistent with SPP: c_ = c1 // 2, cv2 input channels = 4 * c_.
    n, c1, h, w = 2, 8, 16, 16
    c2 = 16
    c_ = c1 // 2
    eps = 1e-5

    x = jax.random.normal(ks[0], (n, c1, h, w), dtype=jnp.float32)

    def conv_w(k, c_out, c_in):
        bound = (6.0 / c_in) ** 0.5
        return jax.random.uniform(k, (c_out, c_in), jnp.float32, -bound, bound)

    w1 = conv_w(ks[1], c_, c1)
    w2 = conv_w(ks[2], c2, 4 * c_)

    bn1 = (jax.random.uniform(ks[3], (c_,), jnp.float32, 0.5, 1.5),    # gamma
           jax.random.normal(ks[4], (c_,), jnp.float32) * 0.1,         # beta
           jax.random.normal(ks[5], (c_,), jnp.float32) * 0.1,         # running_mean
           jax.random.uniform(ks[6], (c_,), jnp.float32, 0.5, 1.5),    # running_var
           eps)
    bn2 = (jax.random.uniform(ks[7], (c2,), jnp.float32, 0.5, 1.5),
           jax.random.normal(ks[8], (c2,), jnp.float32) * 0.1,
           jax.random.normal(ks[9], (c2,), jnp.float32) * 0.1,
           jax.random.uniform(ks[10], (c2,), jnp.float32, 0.5, 1.5),
           eps)

    # f32 path: tight check against the pure-JAX reference.
    out = jax.block_until_ready(spp_forward(x, w1, bn1, w2, bn2))
    ref = spp_reference(x, w1, bn1, w2, bn2)
    assert out.shape == (n, c2, h, w), out.shape
    assert jnp.allclose(out, ref, atol=1e-4, rtol=1e-4), float(jnp.max(jnp.abs(out - ref)))

    # bf16-MXU production path: smoke-test compile/run (operand quantization makes a
    # tight f32 comparison meaningless, so only check shape / finiteness here).
    out_bf16 = jax.block_until_ready(
        spp_forward(x, w1, bn1, w2, bn2, mxu_dtype=jnp.bfloat16))
    assert out_bf16.shape == (n, c2, h, w)
    assert bool(jnp.all(jnp.isfinite(out_bf16)))

    print("KERNEL_OK")
</pallas_src>

<mosaic_0001>
module attributes {stable_mosaic.version = 11 : i64} {
  func.func @_spp_kernel(%arg0: i32, %arg1: memref<8x512xf32, #tpu.memory_space<vmem>>, %arg2: memref<4x8xf32, #tpu.memory_space<vmem>>, %arg3: memref<4x1xf32, #tpu.memory_space<vmem>>, %arg4: memref<16x16xf32, #tpu.memory_space<vmem>>, %arg5: memref<16x1xf32, #tpu.memory_space<vmem>>, %arg6: memref<8x512xf32, #tpu.memory_space<vmem>>, %arg7: memref<16x512xf32, #tpu.memory_space<vmem>>) attributes {dimension_semantics = [#tpu.dimension_semantics<parallel>], iteration_bounds = array<i64: 1>, scalar_prefetch = 0 : i64, scratch_operands = 0 : i64, tpu.core_type = #tpu.core_type<tc>, window_params = [{transform_indices = @transform_0, window_bounds = array<i64: 8, 512>}, {pipeline_mode = #tpu.pipeline_mode<synchronous>, transform_indices = @transform_1, window_bounds = array<i64: 4, 8>}, {pipeline_mode = #tpu.pipeline_mode<synchronous>, transform_indices = @transform_2, window_bounds = array<i64: 4, 1>}, {pipeline_mode = #tpu.pipeline_mode<synchronous>, transform_indices = @transform_3, window_bounds = array<i64: 16, 16>}, {pipeline_mode = #tpu.pipeline_mode<synchronous>, transform_indices = @transform_4, window_bounds = array<i64: 16, 1>}, {pipeline_mode = #tpu.pipeline_mode<synchronous>, transform_indices = @transform_5, window_bounds = array<i64: 8, 512>}, {transform_indices = @transform_6, window_bounds = array<i64: 16, 512>}]} {
    %c0 = arith.constant 0 : index
    %c0_0 = arith.constant 0 : index
    %0 = vector.load %arg6[%c0, %c0_0] : memref<8x512xf32, #tpu.memory_space<vmem>>, vector<8x512xf32>
    %1 = vector.extract_strided_slice %0 {offsets = [0, 0], sizes = [1, 512], strides = [1, 1]} : vector<8x512xf32> to vector<1x512xf32>
    %2 = vector.shape_cast %1 : vector<1x512xf32> to vector<1x512xf32>
    %3 = vector.broadcast %2 : vector<1x512xf32> to vector<4x512xf32>
    %4 = vector.extract_strided_slice %0 {offsets = [1, 0], sizes = [1, 512], strides = [1, 1]} : vector<8x512xf32> to vector<1x512xf32>
    %5 = vector.shape_cast %4 : vector<1x512xf32> to vector<1x512xf32>
    %6 = vector.broadcast %5 : vector<1x512xf32> to vector<4x512xf32>
    %7 = vector.extract_strided_slice %0 {offsets = [2, 0], sizes = [1, 512], strides = [1, 1]} : vector<8x512xf32> to vector<1x512xf32>
    %8 = vector.shape_cast %7 : vector<1x512xf32> to vector<1x512xf32>
    %9 = vector.broadcast %8 : vector<1x512xf32> to vector<4x512xf32>
    %10 = vector.extract_strided_slice %0 {offsets = [3, 0], sizes = [1, 512], strides = [1, 1]} : vector<8x512xf32> to vector<1x512xf32>
    %11 = vector.shape_cast %10 : vector<1x512xf32> to vector<1x512xf32>
    %12 = vector.broadcast %11 : vector<1x512xf32> to vector<4x512xf32>
    %13 = vector.extract_strided_slice %0 {offsets = [4, 0], sizes = [1, 512], strides = [1, 1]} : vector<8x512xf32> to vector<1x512xf32>
    %14 = vector.shape_cast %13 : vector<1x512xf32> to vector<1x512xf32>
    %15 = vector.broadcast %14 : vector<1x512xf32> to vector<4x512xf32>
    %16 = vector.extract_strided_slice %0 {offsets = [5, 0], sizes = [1, 512], strides = [1, 1]} : vector<8x512xf32> to vector<1x512xf32>
    %17 = vector.shape_cast %16 : vector<1x512xf32> to vector<1x512xf32>
    %18 = vector.broadcast %17 : vector<1x512xf32> to vector<4x512xf32>
    %19 = vector.extract_strided_slice %0 {offsets = [6, 0], sizes = [1, 512], strides = [1, 1]} : vector<8x512xf32> to vector<1x512xf32>
    %20 = vector.shape_cast %19 : vector<1x512xf32> to vector<1x512xf32>
    %21 = vector.broadcast %20 : vector<1x512xf32> to vector<4x512xf32>
    %22 = vector.extract_strided_slice %0 {offsets = [7, 0], sizes = [1, 512], strides = [1, 1]} : vector<8x512xf32> to vector<1x512xf32>
    %23 = vector.shape_cast %22 : vector<1x512xf32> to vector<1x512xf32>
    %24 = vector.broadcast %23 : vector<1x512xf32> to vector<4x512xf32>
    %c0_1 = arith.constant 0 : index
    %c0_2 = arith.constant 0 : index
    %25 = vector.load %arg1[%c0_1, %c0_2] : memref<8x512xf32, #tpu.memory_space<vmem>>, vector<8x512xf32>
    %c0_3 = arith.constant 0 : index
    %c0_4 = arith.constant 0 : index
    %26 = vector.load %arg2[%c0_3, %c0_4] : memref<4x8xf32, #tpu.memory_space<vmem>>, vector<4x8xf32>
    %cst = arith.constant dense<0.000000e+00> : vector<4x512xf32>
    %27 = tpu.matmul %26, %25, %cst {dimension_numbers = #tpu.dot_dimension_numbers<[1], [0], [0], [1], [0, 0, 1, 1], [], []>} : vector<4x8xf32>, vector<8x512xf32>, vector<4x512xf32> -> vector<4x512xf32>
    %c0_5 = arith.constant 0 : index
    %c0_6 = arith.constant 0 : index
    %28 = vector.load %arg3[%c0_5, %c0_6] : memref<4x1xf32, #tpu.memory_space<vmem>>, vector<4x1xf32>
    %29 = vector.broadcast %28 : vector<4x1xf32> to vector<4x512xf32>
    %30 = arith.addf %27, %29 : vector<4x512xf32>
    %31 = arith.negf %30 : vector<4x512xf32>
    %32 = math.exp %31 : vector<4x512xf32>
    %cst_7 = arith.constant 1.000000e+00 : f32
    %33 = vector.broadcast %cst_7 : f32 to vector<4x512xf32>
    %34 = arith.addf %33, %32 : vector<4x512xf32>
    %35 = arith.divf %33, %34 : vector<4x512xf32>
    %36 = arith.mulf %30, %35 : vector<4x512xf32>
    %c511_i32 = arith.constant 511 : i32
    %37 = tpu.dynamic_rotate %36 by %c511_i32 dim 1 : vector<4x512xf32>, i32 -> vector<4x512xf32>
    %38 = arith.addf %37, %3 : vector<4x512xf32>
    %c1_i32 = arith.constant 1 : i32
    %39 = tpu.dynamic_rotate %36 by %c1_i32 dim 1 : vector<4x512xf32>, i32 -> vector<4x512xf32>
    %40 = arith.addf %39, %9 : vector<4x512xf32>
    %41 = arith.maximumf %38, %40 : vector<4x512xf32>
    %42 = arith.maximumf %36, %41 : vector<4x512xf32>
    %c510_i32 = arith.constant 510 : i32
    %43 = tpu.dynamic_rotate %36 by %c510_i32 dim 1 : vector<4x512xf32>, i32 -> vector<4x512xf32>
    %44 = arith.addf %43, %6 : vector<4x512xf32>
    %c2_i32 = arith.constant 2 : i32
    %45 = tpu.dynamic_rotate %36 by %c2_i32 dim 1 : vector<4x512xf32>, i32 -> vector<4x512xf32>
    %46 = arith.addf %45, %12 : vector<4x512xf32>
    %47 = arith.maximumf %44, %46 : vector<4x512xf32>
    %48 = arith.maximumf %42, %47 : vector<4x512xf32>
    %c496_i32 = arith.constant 496 : i32
    %49 = tpu.dynamic_rotate %48 by %c496_i32 dim 1 : vector<4x512xf32>, i32 -> vector<4x512xf32>
    %50 = arith.addf %49, %15 : vector<4x512xf32>
    %c16_i32 = arith.constant 16 : i32
    %51 = tpu.dynamic_rotate %48 by %c16_i32 dim 1 : vector<4x512xf32>, i32 -> vector<4x512xf32>
    %52 = arith.addf %51, %21 : vector<4x512xf32>
    %53 = arith.maximumf %50, %52 : vector<4x512xf32>
    %54 = arith.maximumf %48, %53 : vector<4x512xf32>
    %c480_i32 = arith.constant 480 : i32
    %55 = tpu.dynamic_rotate %48 by %c480_i32 dim 1 : vector<4x512xf32>, i32 -> vector<4x512xf32>
    %56 = arith.addf %55, %18 : vector<4x512xf32>
    %c32_i32 = arith.constant 32 : i32
    %57 = tpu.dynamic_rotate %48 by %c32_i32 dim 1 : vector<4x512xf32>, i32 -> vector<4x512xf32>
    %58 = arith.addf %57, %24 : vector<4x512xf32>
    %59 = arith.maximumf %56, %58 : vector<4x512xf32>
    %60 = arith.maximumf %54, %59 : vector<4x512xf32>
    %c511_i32_8 = arith.constant 511 : i32
    %61 = tpu.dynamic_rotate %60 by %c511_i32_8 dim 1 : vector<4x512xf32>, i32 -> vector<4x512xf32>
    %62 = arith.addf %61, %3 : vector<4x512xf32>
    %c1_i32_9 = arith.constant 1 : i32
    %63 = tpu.dynamic_rotate %60 by %c1_i32_9 dim 1 : vector<4x512xf32>, i32 -> vector<4x512xf32>
    %64 = arith.addf %63, %9 : vector<4x512xf32>
    %65 = arith.maximumf %62, %64 : vector<4x512xf32>
    %66 = arith.maximumf %60, %65 : vector<4x512xf32>
    %c510_i32_10 = arith.constant 510 : i32
    %67 = tpu.dynamic_rotate %60 by %c510_i32_10 dim 1 : vector<4x512xf32>, i32 -> vector<4x512xf32>
    %68 = arith.addf %67, %6 : vector<4x512xf32>
    %c2_i32_11 = arith.constant 2 : i32
    %69 = tpu.dynamic_rotate %60 by %c2_i32_11 dim 1 : vector<4x512xf32>, i32 -> vector<4x512xf32>
    %70 = arith.addf %69, %12 : vector<4x512xf32>
    %71 = arith.maximumf %68, %70 : vector<4x512xf32>
    %72 = arith.maximumf %66, %71 : vector<4x512xf32>
    %c496_i32_12 = arith.constant 496 : i32
    %73 = tpu.dynamic_rotate %72 by %c496_i32_12 dim 1 : vector<4x512xf32>, i32 -> vector<4x512xf32>
    %74 = arith.addf %73, %15 : vector<4x512xf32>
    %c16_i32_13 = arith.constant 16 : i32
    %75 = tpu.dynamic_rotate %72 by %c16_i32_13 dim 1 : vector<4x512xf32>, i32 -> vector<4x512xf32>
    %76 = arith.addf %75, %21 : vector<4x512xf32>
    %77 = arith.maximumf %74, %76 : vector<4x512xf32>
    %78 = arith.maximumf %72, %77 : vector<4x512xf32>
    %c480_i32_14 = arith.constant 480 : i32
    %79 = tpu.dynamic_rotate %72 by %c480_i32_14 dim 1 : vector<4x512xf32>, i32 -> vector<4x512xf32>
    %80 = arith.addf %79, %18 : vector<4x512xf32>
    %c32_i32_15 = arith.constant 32 : i32
    %81 = tpu.dynamic_rotate %72 by %c32_i32_15 dim 1 : vector<4x512xf32>, i32 -> vector<4x512xf32>
    %82 = arith.addf %81, %24 : vector<4x512xf32>
    %83 = arith.maximumf %80, %82 : vector<4x512xf32>
    %84 = arith.maximumf %78, %83 : vector<4x512xf32>
    %c511_i32_16 = arith.constant 511 : i32
    %85 = tpu.dynamic_rotate %84 by %c511_i32_16 dim 1 : vector<4x512xf32>, i32 -> vector<4x512xf32>
    %86 = arith.addf %85, %3 : vector<4x512xf32>
    %c1_i32_17 = arith.constant 1 : i32
    %87 = tpu.dynamic_rotate %84 by %c1_i32_17 dim 1 : vector<4x512xf32>, i32 -> vector<4x512xf32>
    %88 = arith.addf %87, %9 : vector<4x512xf32>
    %89 = arith.maximumf %86, %88 : vector<4x512xf32>
    %90 = arith.maximumf %84, %89 : vector<4x512xf32>
    %c510_i32_18 = arith.constant 510 : i32
    %91 = tpu.dynamic_rotate %84 by %c510_i32_18 dim 1 : vector<4x512xf32>, i32 -> vector<4x512xf32>
    %92 = arith.addf %91, %6 : vector<4x512xf32>
    %c2_i32_19 = arith.constant 2 : i32
    %93 = tpu.dynamic_rotate %84 by %c2_i32_19 dim 1 : vector<4x512xf32>, i32 -> vector<4x512xf32>
    %94 = arith.addf %93, %12 : vector<4x512xf32>
    %95 = arith.maximumf %92, %94 : vector<4x512xf32>
    %96 = arith.maximumf %90, %95 : vector<4x512xf32>
    %c496_i32_20 = arith.constant 496 : i32
    %97 = tpu.dynamic_rotate %96 by %c496_i32_20 dim 1 : vector<4x512xf32>, i32 -> vector<4x512xf32>
    %98 = arith.addf %97, %15 : vector<4x512xf32>
    %c16_i32_21 = arith.constant 16 : i32
    %99 = tpu.dynamic_rotate %96 by %c16_i32_21 dim 1 : vector<4x512xf32>, i32 -> vector<4x512xf32>
    %100 = arith.addf %99, %21 : vector<4x512xf32>
    %101 = arith.maximumf %98, %100 : vector<4x512xf32>
    %102 = arith.maximumf %96, %101 : vector<4x512xf32>
    %c480_i32_22 = arith.constant 480 : i32
    %103 = tpu.dynamic_rotate %96 by %c480_i32_22 dim 1 : vector<4x512xf32>, i32 -> vector<4x512xf32>
    %104 = arith.addf %103, %18 : vector<4x512xf32>
    %c32_i32_23 = arith.constant 32 : i32
    %105 = tpu.dynamic_rotate %96 by %c32_i32_23 dim 1 : vector<4x512xf32>, i32 -> vector<4x512xf32>
    %106 = arith.addf %105, %24 : vector<4x512xf32>
    %107 = arith.maximumf %104, %106 : vector<4x512xf32>
    %108 = arith.maximumf %102, %107 : vector<4x512xf32>
    %109 = tpu.concatenate %36, %60, %84, %108 in 0 : vector<4x512xf32>, vector<4x512xf32>, vector<4x512xf32>, vector<4x512xf32> -> vector<16x512xf32>
    %c0_24 = arith.constant 0 : index
    %c0_25 = arith.constant 0 : index
    %110 = vector.load %arg4[%c0_24, %c0_25] : memref<16x16xf32, #tpu.memory_space<vmem>>, vector<16x16xf32>
    %cst_26 = arith.constant dense<0.000000e+00> : vector<16x512xf32>
    %111 = tpu.matmul %110, %109, %cst_26 {dimension_numbers = #tpu.dot_dimension_numbers<[1], [0], [0], [1], [0, 0, 1, 1], [], []>} : vector<16x16xf32>, vector<16x512xf32>, vector<16x512xf32> -> vector<16x512xf32>
    %c0_27 = arith.constant 0 : index
    %c0_28 = arith.constant 0 : index
    %112 = vector.load %arg5[%c0_27, %c0_28] : memref<16x1xf32, #tpu.memory_space<vmem>>, vector<16x1xf32>
    %113 = vector.broadcast %112 : vector<16x1xf32> to vector<16x512xf32>
    %114 = arith.addf %111, %113 : vector<16x512xf32>
    %115 = arith.negf %114 : vector<16x512xf32>
    %116 = math.exp %115 : vector<16x512xf32>
    %cst_29 = arith.constant 1.000000e+00 : f32
    %117 = vector.broadcast %cst_29 : f32 to vector<16x512xf32>
    %118 = arith.addf %117, %116 : vector<16x512xf32>
    %119 = arith.divf %117, %118 : vector<16x512xf32>
    %120 = arith.mulf %114, %119 : vector<16x512xf32>
    %c0_30 = arith.constant 0 : index
    %c0_31 = arith.constant 0 : index
    %121 = vector.load %arg7[%c0_30, %c0_31] : memref<16x512xf32, #tpu.memory_space<vmem>>, vector<16x512xf32>
    tpu.vector_store %arg7[%c0_30, %c0_31], %120 {strides = array<i32>} : memref<16x512xf32, #tpu.memory_space<vmem>>, vector<16x512xf32>,
    return
  }
  func.func @transform_0(%arg0: i32) -> (i32, i32) {
    %c0_i32 = arith.constant 0 : i32
    %c0_i32_0 = arith.constant 0 : i32
    return %c0_i32, %arg0 : i32, i32
  }
  func.func @transform_1(%arg0: i32) -> (i32, i32) {
    %c0_i32 = arith.constant 0 : i32
    %c0_i32_0 = arith.constant 0 : i32
    %c0_i32_1 = arith.constant 0 : i32
    return %c0_i32, %c0_i32_0 : i32, i32
  }
  func.func @transform_2(%arg0: i32) -> (i32, i32) {
    %c0_i32 = arith.constant 0 : i32
    %c0_i32_0 = arith.constant 0 : i32
    %c0_i32_1 = arith.constant 0 : i32
    return %c0_i32, %c0_i32_0 : i32, i32
  }
  func.func @transform_3(%arg0: i32) -> (i32, i32) {
    %c0_i32 = arith.constant 0 : i32
    %c0_i32_0 = arith.constant 0 : i32
    %c0_i32_1 = arith.constant 0 : i32
    return %c0_i32, %c0_i32_0 : i32, i32
  }
  func.func @transform_4(%arg0: i32) -> (i32, i32) {
    %c0_i32 = arith.constant 0 : i32
    %c0_i32_0 = arith.constant 0 : i32
    %c0_i32_1 = arith.constant 0 : i32
    return %c0_i32, %c0_i32_0 : i32, i32
  }
  func.func @transform_5(%arg0: i32) -> (i32, i32) {
    %c0_i32 = arith.constant 0 : i32
    %c0_i32_0 = arith.constant 0 : i32
    %c0_i32_1 = arith.constant 0 : i32
    return %c0_i32, %c0_i32_0 : i32, i32
  }
  func.func @transform_6(%arg0: i32) -> (i32, i32) {
    %c0_i32 = arith.constant 0 : i32
    %c0_i32_0 = arith.constant 0 : i32
    return %c0_i32, %arg0 : i32, i32
  }
}

</mosaic_0001>

<bundles_post_ra>
// kernel: tpu_custom_call.1
= control target key start
LH: loop header
LB: loop body
LE: loop exit
PB: predicated region body
PF: predicated region fallthrough
CT: control target
= control target key end

     0   :  { %11 = vsyncpa [#allocation3], 0  ;;  %s2069_s0 = inlined_call_operand.hbm [shape: f32[8,512], index: 0, kind: input, shape index: {}]   ;;  %s2070_s1 = inlined_call_operand.vmem [shape: f32[4,8], index: 1, kind: input, shape index: {}]   ;;  %s2071_s2 = inlined_call_operand.vmem [shape: f32[4,1], index: 2, kind: input, shape index: {}]   ;;  %s2072_s3 = inlined_call_operand.vmem [shape: f32[16,16], index: 3, kind: input, shape index: {}]   ;;  %s2073_s4 = inlined_call_operand.vmem [shape: f32[16,1], index: 4, kind: input, shape index: {}]   ;;  %s2074_s5 = inlined_call_operand.hbm [shape: f32[8,512], index: 5, kind: input, shape index: {}]   ;;  %s2075_s6 = inlined_call_operand.hbm [shape: f32[16,512], index: 6, kind: output, shape index: {}]  }
   0x1   :  { %12 = vsyncpa [#allocation6], 0 }
   0x2   :  { %13 = vsyncpa [#allocation4], 0  ;;  %s1293_s21 = smov [#allocation2]   ;;  %s1294_s23 = smov [#allocation5]  }
   0x3   :  { %s20_s22 = sshll.u32 %s1293_s21, 4  ;;  %s38_s24 = sshll.u32 %s1294_s23, 4  ;;  %s21_s22 = int_to_ptr.vmem [resolvable:$true] %s20_s22  ;;  %s39_s24 = int_to_ptr.vmem [resolvable:$true] %s38_s24 }
   0x4   :  { %s1235_s25 = scalar_lea.vmem %s21_s22, 512  ;;  %p1240_p1 = scmp.lt.s32.totalorder %s21_s22, %s21_s22 }
   0x5   :  { %p1236_p0 = scmp.ne.s32.totalorder %s21_s22, %s1235_s25  ;;  %p1241_p2 = scmp.lt.s32.totalorder %s1235_s25, %s1235_s25 }
   0x7   :  { %p1242_p3 = por %p1241_p2, %p1240_p1 }
   0x9   :  { %p1243_p4 = pnand %p1242_p3, %p1236_p0 }
   0xb   :  { %1246 = shalt.err (!%p1243_p4)
}
   0xc   :  { %23 = dma.hbm_to_vmem [thread:$0]  %s2069_s0, 512, %s21_s22, [#allocation3]  }
   0xd   :  { %s1255_s28 = scalar_lea.vmem %s39_s24, 512  ;;  %p1260_p6 = scmp.lt.s32.totalorder %s39_s24, %s39_s24 }
   0xe   :  { %p1256_p5 = scmp.ne.s32.totalorder %s39_s24, %s1255_s28  ;;  %p1261_p7 = scmp.lt.s32.totalorder %s1255_s28, %s1255_s28 }
  0x10   :  { %p1262_p8 = por %p1261_p7, %p1260_p6 }
  0x12   :  { %p1263_p9 = pnand %p1262_p8, %p1256_p5 }
  0x14   :  { %1266 = shalt.err (!%p1263_p9)
}
  0x15   :  { %41 = dma.hbm_to_vmem [thread:$0]  %s2074_s5, 512, %s39_s24, [#allocation6]  }
  0x16   :  { %1287 = dma.done.wait [#allocation3], 512  }
  0x17   :  { %1288 = vsyncadd [#allocation3], 4294966784 }
  0x18   :  { %1289 = dma.done.wait [#allocation6], 512  }
  0x19   :  { %1290 = vsyncadd [#allocation6], 4294966784  ;;  %v2076_v0 = vmov 0.0   ;;  %v1296_v1 = vmov 0   ;;  %v181_v2 = vld [vmem:[#allocation2 + $0x8] sm:$0xff]  ;;  %v183_v3 = vld [vmem:[#allocation2 + $0x18] sm:$0xff]  ;;  %v52_v41 = vlaneseq }
  0x1a   :  { %259 = vmatprep.mubr.f32.mxu0 %v2076_v0  ;;  %330 = vmatprep.mubr.f32.mxu1 %v2076_v0  ;;  %v180_v4 = vld [vmem:[#allocation2] sm:$0xff]  ;;  %vm191_vm0 = vcmask 64512   ;;  %v182_v5 = vld [vmem:[#allocation2 + $0x10] sm:$0xff]  ;;  %s1299_s9 = smov 126   ;;  %s1300_s10 = smov 2   ;;  %v1405_v50 = vld [vmem:[#allocation5 + $0x18] sm:$0xff] }
  0x1b   :  { %1177 = vset.pattern.permute.xlu0 %v1296_v1  ;;  %1178 = vset.pattern.permute.xlu1 %v1296_v1  ;;  %v184_v6 = vld [vmem:[%s2070_s1] sm:$0xf]  ;;  %s1297_s1 = smov 127   ;;  %v1398_v44 = vshrl.u32 %v52_v41, 7  ;;  %v1400_v46 = vand.u32 127, %v52_v41  ;;  %v1403_v49 = vld [vmem:[#allocation5 + $0x10] sm:$0xff] }
  0x1c   :  { %225 = vmatprep.subr.mxu0 %v181_v2  ;;  %296 = vmatprep.subr.mxu1 %v183_v3  ;;  %v185_v7 = vld [vmem:[%s2071_s2] sm:$0xf]  ;;  %s1298_s2 = smov 1   ;;  %v1408_v52 = vld [vmem:[#allocation5 + $0x8] sm:$0xff]  ;;  %s1301_s11 = smov 112   ;;  %vm879_vm9 = vcmask 1043456  }
  0x1d   :  { %226 = vmatpush1.msra.mxu0 %v180_v4  ;;  %297 = vmatpush1.msra.mxu1 %v182_v5  ;;  %v54_v48 = vsub.s32 0, %v1398_v44  ;;  %v86_v51 = vsub.s32 2, %v1398_v44  ;;  %v1410_v53 = vld [vmem:[#allocation5] sm:$0xff]  ;;  %v70_v54 = vsub.s32 1, %v1398_v44  ;;  %vm375_vm1 = vcmp.lt.s32.totalorder %v1400_v46, 127  ;;  %s1302_s12 = smov 16  }
  0x1e   :  { %1145 = vmatmul.mubr.msk.f32.vlgmr.msra.gmra.mxu0 %vm191_vm0, %v184_v6  ;;  %1146 = vmatmul.mubr.msk.f32.vlgmr.msra.gmra.mxu1 %vm191_vm0, %v184_v6  ;;  %vm392_vm2 = vcmp.lt.s32.totalorder %v1400_v46, 1  ;;  %v102_v59 = vsub.s32 3, %v1398_v44  ;;  %vm417_vm3 = vcmp.lt.s32.totalorder %v1400_v46, 126  ;;  %vm434_vm4 = vcmp.lt.s32.totalorder %v1400_v46, 2  ;;  %s1303_s13 = smov 96   ;;  %s1304_s14 = smov 32  }
  0x1f   :  { %188 = vperm.xlu0 %1177, %v185_v7   ;;  %973 = vmatprep.mubr.f32.mxu0 %v2076_v0  ;;  %v1415_v57 = vrot.slane %v1403_v49, %v54_v48  ;;  %v1418_v58 = vrot.slane %v1405_v50, %v54_v48  ;;  %v1423_v60 = vrot.slane %v1408_v52, %v86_v51  ;;  %vm476_vm5 = vcmp.lt.s32.totalorder %v1400_v46, 16 }
  0x20   :  { %1050 = vmatprep.mubr.f32.mxu1 %v2076_v0  ;;  %v1426_v61 = vrot.slane %v1403_v49, %v86_v51  ;;  %v1429_v62 = vrot.slane %v1410_v53, %v86_v51  ;;  %v1432_v63 = vrot.slane %v1405_v50, %v86_v51  ;;  %v1436_v1 = vrot.slane %v1410_v53, %v70_v54 }
  0x21   :  { %v1439_v2 = vrot.slane %v1408_v52, %v70_v54  ;;  %v1442_v4 = vrot.slane %v1403_v49, %v70_v54  ;;  %vm459_vm6 = vcmp.lt.s32.totalorder %v1400_v46, 112  ;;  %vm501_vm7 = vcmp.lt.s32.totalorder %v1400_v46, 96 }
  0x22   :  { %vm518_vm8 = vcmp.lt.s32.totalorder %v1400_v46, 32  ;;  %vm902_vm10 = vcmask 130048  }
  0x9a   :  { %v189_v8 = vpop.permute.xlu0 %188 }
  0xde   :  { %v261_v9 = vpop.f32.mrf.mxu0  ;;  %v332_v10 = vpop.f32.mrf.mxu1 }
  0xdf   :  { %v262_v11 = vadd.f32 %v261_v9, %v189_v8  ;;  %v333_v12 = vadd.f32 %v332_v10, %v189_v8  ;;  %v1451_v9 = vrot.slane %v1405_v50, %v70_v54  ;;  %v1454_v10 = vrot.slane %v1410_v53, %v54_v48 }
  0xe0   :  { %v263_v13 = vpop.f32.mrf.mxu0  ;;  %v334_v14 = vpop.f32.mrf.mxu1 }
  0xe1   :  { %v1147_v15 = vmul.f32 -1.442695, %v262_v11  ;;  %v1149_v16 = vmul.f32 -1.442695, %v333_v12  ;;  %v264_v17 = vadd.f32 %v263_v13, %v189_v8  ;;  %v335_v18 = vadd.f32 %v334_v14, %v189_v8 }
  0xe3   :  { %1179 = vpow2.f32 %v1147_v15  ;;  %v1148_v19 = vmul.f32 -1.442695, %v264_v17  ;;  %v1150_v20 = vmul.f32 -1.442695, %v335_v18  ;;  %v1468_v15 = vrot.slane %v1403_v49, %v102_v59 }
  0xe4   :  { %1181 = vpow2.f32 %v1149_v16  ;;  %v1471_v16 = vrot.slane %v1410_v53, %v102_v59 }
  0xe5   :  { %1183 = vpow2.f32 %v1148_v19 }
  0xe6   :  { %1185 = vpow2.f32 %v1150_v20 }
  0xf0   :  { %v1180_v21 = vpop.eup %1179 }
  0xf1   :  { %v1182_v22 = vpop.eup %1181  ;;  %v349_v23 = vadd.f32 1.0, %v1180_v21  ;;  %v1477_v21 = vrot.slane %v1405_v50, %v102_v59 }
  0xf2   :  { %v1184_v24 = vpop.eup %1183  ;;  %v351_v25 = vadd.f32 1.0, %v1182_v22 }
  0xf3   :  { %v1186_v26 = vpop.eup %1185  ;;  %1187 = vrcp.f32 %v349_v23  ;;  %v350_v28 = vadd.f32 1.0, %v1184_v24 }
  0xf4   :  { %1189 = vrcp.f32 %v351_v25  ;;  %v352_v27 = vadd.f32 1.0, %v1186_v26 }
  0xf6   :  { %1191 = vrcp.f32 %v352_v27 }
  0xf7   :  { %1193 = vrcp.f32 %v350_v28 }
 0x100   :  { %v1188_v29 = vpop.eup %1187 }
 0x101   :  { %v1190_v30 = vpop.eup %1189  ;;  %v1358_v31 = vmul.f32 %v1188_v29, %v262_v11  ;;  %v1457_v11 = vrot.slane %v1408_v52, %v54_v48 }
 0x102   :  { %v1360_v32 = vmul.f32 %v1190_v30, %v333_v12  ;;  %v1461_v12 = vrot.slane %v1408_v52, %v102_v59 }
 0x103   :  { %2086 = vst [vmem:[#allocation11_spill] sm:$0xff] %v1358_v31  ;;  %v1192_v33 = vpop.eup %1191  ;;  %365 = vrot.lane.b32.xlu0 %v1358_v31, %s1297_s1 }
 0x104   :  { %2087 = vst [vmem:[#allocation12_spill] sm:$0xff] %v1360_v32  ;;  %369 = vrot.lane.b32.xlu1 %v1360_v32, %s1297_s1  ;;  %v1366_v34 = vmul.f32 %v1192_v33, %v335_v18  ;;  %v1194_v35 = vpop.eup %1193 }
 0x105   :  { %v1372_v36 = vmul.f32 %v1194_v35, %v264_v17 }
 0x106   :  { %2088 = vst [vmem:[#allocation13_spill] sm:$0xff] %v1366_v34 }
 0x107   :  { %371 = vrot.lane.b32.xlu0 %v1366_v34, %s1297_s1  ;;  %2089 = vst [vmem:[#allocation14_spill] sm:$0xff] %v1372_v36 }
 0x108   :  { %384 = vrot.lane.b32.xlu1 %v1358_v31, %s1298_s2 }
 0x10b   :  { %386 = vrot.lane.b32.xlu0 %v1372_v36, %s1298_s2 }
 0x10c   :  { %388 = vrot.lane.b32.xlu1 %v1360_v32, %s1298_s2 }
 0x10f   :  { %390 = vrot.lane.b32.xlu0 %v1366_v34, %s1298_s2 }
 0x110   :  { %409 = vrot.lane.b32.xlu1 %v1358_v31, %s1299_s9 }
 0x113   :  { %411 = vrot.lane.b32.xlu0 %v1372_v36, %s1299_s9 }
 0x114   :  { %413 = vrot.lane.b32.xlu1 %v1360_v32, %s1299_s9 }
 0x117   :  { %415 = vrot.lane.b32.xlu0 %v1366_v34, %s1299_s9 }
 0x118   :  { %426 = vrot.lane.b32.xlu1 %v1358_v31, %s1300_s10 }
 0x11b   :  { %428 = vrot.lane.b32.xlu0 %v1372_v36, %s1300_s10 }
 0x11c   :  { %367 = vrot.lane.b32.xlu1 %v1372_v36, %s1297_s1 }
 0x11f   :  { %432 = vrot.lane.b32.xlu0 %v1366_v34, %s1300_s10 }
 0x120   :  { %430 = vrot.lane.b32.xlu1 %v1360_v32, %s1300_s10 }
 0x175   :  { %v366_v37 = vpop.permute.xlu0 %365 }
 0x176   :  { %v370_v38 = vpop.permute.xlu1 %369 }
 0x179   :  { %v372_v39 = vpop.permute.xlu0 %371 }
 0x17a   :  { %v385_v40 = vpop.permute.xlu1 %384  ;;  %v376_v5 = vsel %vm375_vm1, %v370_v38, %v372_v39  ;;  %v379_v6 = vsel %vm375_vm1, %v372_v39, %v366_v37 }
 0x17b   :  { %v382_v17 = vadd.f32 %v376_v5, %v1415_v57  ;;  %v383_v18 = vadd.f32 %v379_v6, %v1418_v58 }
 0x17d   :  { %v387_v42 = vpop.permute.xlu0 %386 }
 0x17e   :  { %v389_v43 = vpop.permute.xlu1 %388  ;;  %v395_v13 = vsel %vm392_vm2, %v385_v40, %v387_v42 }
 0x17f   :  { %v394_v22 = vsel %vm392_vm2, %v387_v42, %v389_v43  ;;  %v398_v27 = vadd.f32 %v395_v13, %v1423_v60 }
 0x180   :  { %v399_v41 = vadd.f32 %v394_v22, %v1426_v61 }
 0x181   :  { %v391_v45 = vpop.permute.xlu0 %390 }
 0x182   :  { %v410_v47 = vpop.permute.xlu1 %409  ;;  %v393_v7 = vsel %vm392_vm2, %v389_v43, %v391_v45  ;;  %v396_v14 = vsel %vm392_vm2, %v391_v45, %v385_v40 }
 0x183   :  { %v400_v19 = vadd.f32 %v393_v7, %v1432_v63  ;;  %v397_v28 = vadd.f32 %v396_v14, %v1429_v62  ;;  %v403_v14 = vmax.f32 %v382_v17, %v399_v41 }
 0x185   :  { %v412_v55 = vpop.permute.xlu0 %411  ;;  %v404_v42 = vmax.f32 %v383_v18, %v400_v19 }
 0x186   :  { %v414_v56 = vpop.permute.xlu1 %413  ;;  %v420_v24 = vsel %vm417_vm3, %v410_v47, %v412_v55 }
 0x187   :  { %v419_v23 = vsel %vm417_vm3, %v412_v55, %v414_v56  ;;  %v422_v43 = vadd.f32 %v420_v24, %v1436_v1 }
 0x188   :  { %v423_v45 = vadd.f32 %v419_v23, %v1439_v2 }
 0x189   :  { %v416_v3 = vpop.permute.xlu0 %415 }
 0x18a   :  { %v427_v8 = vpop.permute.xlu1 %426  ;;  %v421_v33 = vsel %vm417_vm3, %v416_v3, %v410_v47 }
 0x18b   :  { %v425_v55 = vadd.f32 %v421_v33, %v1451_v9 }
 0x18d   :  { %v429_v20 = vpop.permute.xlu0 %428 }
 0x18e   :  { %v368_v25 = vpop.permute.xlu1 %367  ;;  %v437_v26 = vsel %vm434_vm4, %v427_v8, %v429_v20 }
 0x18f   :  { %v377_v29 = vsel %vm375_vm1, %v368_v25, %v370_v38  ;;  %v378_v30 = vsel %vm375_vm1, %v366_v37, %v368_v25  ;;  %v440_v40 = vadd.f32 %v437_v26, %v1461_v12  ;;  %v418_v37 = vsel %vm417_vm3, %v414_v56, %v416_v3 }
 0x190   :  { %v380_v35 = vadd.f32 %v378_v30, %v1454_v10  ;;  %v381_v39 = vadd.f32 %v377_v29, %v1457_v11  ;;  %v408_v25 = vmax.f32 %v1366_v34, %v404_v42  ;;  %v407_v26 = vmax.f32 %v1360_v32, %v403_v14 }
 0x191   :  { %v433_v38 = vpop.permute.xlu0 %432  ;;  %v444_v13 = vmax.f32 %v423_v45, %v440_v40  ;;  %v150_v40 = vsub.s32 6, %v1398_v44 }
 0x192   :  { %v401_v48 = vmax.f32 %v380_v35, %v397_v28  ;;  %v402_v51 = vmax.f32 %v381_v39, %v398_v27  ;;  %v431_v47 = vpop.permute.xlu1 %430  ;;  %v438_v54 = vsel %vm434_vm4, %v433_v38, %v427_v8  ;;  %v424_v8 = vadd.f32 %v418_v37, %v1442_v4 }
 0x193   :  { %v436_v59 = vsel %vm434_vm4, %v429_v20, %v431_v47  ;;  %v435_v5 = vsel %vm434_vm4, %v431_v47, %v433_v38  ;;  %v439_v6 = vadd.f32 %v438_v54, %v1471_v16  ;;  %v1562_v45 = vrot.slane %v1408_v52, %v150_v40 }
 0x194   :  { %v406_v7 = vmax.f32 %v1372_v36, %v402_v51  ;;  %v441_v56 = vadd.f32 %v436_v59, %v1468_v15  ;;  %v442_v3 = vadd.f32 %v435_v5, %v1477_v21  ;;  %v405_v18 = vmax.f32 %v1358_v31, %v401_v48 }
 0x195   :  { %v443_v19 = vmax.f32 %v422_v43, %v439_v6  ;;  %v118_v43 = vsub.s32 4, %v1398_v44  ;;  %v134_v48 = vsub.s32 5, %v1398_v44  ;;  %v166_v6 = vsub.s32 7, %v1398_v44 }
 0x196   :  { %v1516_v22 = vmax.f32 %v406_v7, %v444_v13  ;;  %v446_v20 = vmax.f32 %v425_v55, %v442_v3  ;;  %v445_v23 = vmax.f32 %v424_v8, %v441_v56  ;;  %v1585_v13 = vrot.slane %v1410_v53, %v150_v40 }
 0x197   :  { %v1518_v24 = vmax.f32 %v405_v18, %v443_v19  ;;  %v1568_v47 = vrot.slane %v1410_v53, %v118_v43  ;;  %v1572_v54 = vrot.slane %v1408_v52, %v118_v43  ;;  %v1575_v55 = vrot.slane %v1405_v50, %v118_v43 }
 0x198   :  { %453 = vrot.lane.b32.xlu0 %v1516_v22, %s1301_s11  ;;  %v1526_v17 = vmax.f32 %v408_v25, %v446_v20  ;;  %v1528_v27 = vmax.f32 %v407_v26, %v445_v23  ;;  %v1578_v59 = vrot.slane %v1403_v49, %v118_v43  ;;  %v1588_v56 = vrot.slane %v1403_v49, %v150_v40 }
 0x199   :  { %451 = vrot.lane.b32.xlu1 %v1518_v24, %s1301_s11  ;;  %v1591_v3 = vrot.slane %v1405_v50, %v150_v40  ;;  %v1596_v18 = vrot.slane %v1410_v53, %v134_v48  ;;  %v1600_v44 = vrot.slane %v1405_v50, %v134_v48  ;;  %v1606_v25 = vrot.slane %v1408_v52, %v134_v48 }
 0x19a   :  { %v1609_v26 = vrot.slane %v1403_v49, %v134_v48  ;;  %v1616_v43 = vrot.slane %v1408_v52, %v166_v6  ;;  %v1628_v52 = vrot.slane %v1410_v53, %v166_v6  ;;  %v1631_v34 = vrot.slane %v1403_v49, %v166_v6 }
 0x19c   :  { %457 = vrot.lane.b32.xlu0 %v1526_v17, %s1301_s11 }
 0x19d   :  { %455 = vrot.lane.b32.xlu1 %v1528_v27, %s1301_s11 }
 0x1a0   :  { %470 = vrot.lane.b32.xlu0 %v1516_v22, %s1302_s12 }
 0x1a1   :  { %468 = vrot.lane.b32.xlu1 %v1518_v24, %s1302_s12 }
 0x1a4   :  { %474 = vrot.lane.b32.xlu0 %v1526_v17, %s1302_s12 }
 0x1a5   :  { %472 = vrot.lane.b32.xlu1 %v1528_v27, %s1302_s12 }
 0x1a8   :  { %495 = vrot.lane.b32.xlu0 %v1516_v22, %s1303_s13 }
 0x1a9   :  { %493 = vrot.lane.b32.xlu1 %v1518_v24, %s1303_s13 }
 0x1ac   :  { %499 = vrot.lane.b32.xlu0 %v1526_v17, %s1303_s13 }
 0x1ad   :  { %497 = vrot.lane.b32.xlu1 %v1528_v27, %s1303_s13 }
 0x1b0   :  { %512 = vrot.lane.b32.xlu0 %v1516_v22, %s1304_s14 }
 0x1b1   :  { %510 = vrot.lane.b32.xlu1 %v1518_v24, %s1304_s14 }
 0x1b4   :  { %516 = vrot.lane.b32.xlu0 %v1526_v17, %s1304_s14 }
 0x1b5   :  { %514 = vrot.lane.b32.xlu1 %v1528_v27, %s1304_s14 }
 0x20a   :  { %v454_v28 = vpop.permute.xlu0 %453 }
 0x20b   :  { %v452_v29 = vpop.permute.xlu1 %451 }
 0x20e   :  { %v458_v30 = vpop.permute.xlu0 %457 }
 0x20f   :  { %v456_v33 = vpop.permute.xlu1 %455  ;;  %v463_v40 = vsel %vm459_vm6, %v458_v30, %v452_v29 }
 0x210   :  { %v461_v5 = vsel %vm459_vm6, %v454_v28, %v456_v33 }
 0x211   :  { %v465_v20 = vadd.f32 %v461_v5, %v1572_v54 }
 0x212   :  { %v471_v35 = vpop.permute.xlu0 %470 }
 0x213   :  { %v469_v39 = vpop.permute.xlu1 %468 }
 0x214   :  { %v479_v37 = vsel %vm476_vm5, %v469_v39, %v471_v35 }
 0x215   :  { %v482_v7 = vadd.f32 %v479_v37, %v1562_v45 }
 0x216   :  { %v475_v41 = vpop.permute.xlu0 %474 }
 0x217   :  { %v473_v42 = vpop.permute.xlu1 %472  ;;  %v480_v8 = vsel %vm476_vm5, %v475_v41, %v469_v39  ;;  %v462_v39 = vsel %vm459_vm6, %v452_v29, %v454_v28  ;;  %v486_v37 = vmax.f32 %v465_v20, %v482_v7 }
 0x218   :  { %v477_v23 = vsel %vm476_vm5, %v473_v42, %v475_v41  ;;  %v460_v41 = vsel %vm459_vm6, %v456_v33, %v458_v30  ;;  %v481_v5 = vadd.f32 %v480_v8, %v1585_v13  ;;  %v478_v28 = vsel %vm476_vm5, %v471_v35, %v473_v42 }
 0x219   :  { %v484_v29 = vadd.f32 %v477_v23, %v1591_v3  ;;  %v464_v30 = vadd.f32 %v462_v39, %v1568_v47  ;;  %v467_v33 = vadd.f32 %v463_v40, %v1575_v55  ;;  %v1638_v8 = vrot.slane %v1405_v50, %v166_v6 }
 0x21a   :  { %v496_v38 = vpop.permute.xlu0 %495  ;;  %v466_v35 = vadd.f32 %v460_v41, %v1578_v59  ;;  %v490_v20 = vmax.f32 %v1516_v22, %v486_v37  ;;  %v483_v39 = vadd.f32 %v478_v28, %v1588_v56 }
 0x21b   :  { %v494_v51 = vpop.permute.xlu1 %493  ;;  %v485_v23 = vmax.f32 %v464_v30, %v481_v5  ;;  %v488_v50 = vmax.f32 %v467_v33, %v484_v29 }
 0x21c   :  { %v504_v42 = vsel %vm501_vm7, %v494_v51, %v496_v38  ;;  %v487_v29 = vmax.f32 %v466_v35, %v483_v39 }
 0x21e   :  { %v500_v14 = vpop.permute.xlu0 %499 }
 0x21f   :  { %v498_v19 = vpop.permute.xlu1 %497  ;;  %v505_v40 = vsel %vm501_vm7, %v500_v14, %v494_v51 }
 0x220   :  { %v503_v48 = vsel %vm501_vm7, %v496_v38, %v498_v19  ;;  %v502_v6 = vsel %vm501_vm7, %v498_v19, %v500_v14  ;;  %v509_v5 = vadd.f32 %v505_v40, %v1600_v44 }
 0x221   :  { %v507_v53 = vadd.f32 %v503_v48, %v1606_v25  ;;  %v508_v30 = vadd.f32 %v502_v6, %v1609_v26 }
 0x222   :  { %v513_v0 = vpop.permute.xlu0 %512 }
 0x223   :  { %v511_v32 = vpop.permute.xlu1 %510 }
 0x224   :  { %v521_v7 = vsel %vm518_vm8, %v511_v32, %v513_v0 }
 0x225   :  { %v524_v49 = vadd.f32 %v521_v7, %v1616_v43  ;;  %v506_v7 = vadd.f32 %v504_v42, %v1596_v18  ;;  %v492_v42 = vmax.f32 %v1526_v17, %v488_v50 }
 0x226   :  { %v517_v31 = vpop.permute.xlu0 %516 }
 0x227   :  { %v528_v41 = vmax.f32 %v507_v53, %v524_v49  ;;  %v522_v38 = vsel %vm518_vm8, %v517_v31, %v511_v32  ;;  %v515_v48 = vpop.permute.xlu1 %514  ;;  %v489_v32 = vmax.f32 %v1518_v24, %v485_v23 }
 0x228   :  { %v523_v22 = vadd.f32 %v522_v38, %v1628_v52  ;;  %v519_v37 = vsel %vm518_vm8, %v515_v48, %v517_v31  ;;  %v520_v51 = vsel %vm518_vm8, %v513_v0, %v515_v48 }
 0x229   :  { %v1660_v28 = vmax.f32 %v490_v20, %v528_v41  ;;  %v525_v14 = vadd.f32 %v520_v51, %v1631_v34  ;;  %v526_v19 = vadd.f32 %v519_v37, %v1638_v8  ;;  %v491_v20 = vmax.f32 %v1528_v27, %v487_v29 }
 0x22a   :  { %v527_v33 = vmax.f32 %v506_v7, %v523_v22 }
 0x22b   :  { %2090 = vst [vmem:[#allocation15_spill] sm:$0xff] %v1660_v28  ;;  %v530_v31 = vmax.f32 %v509_v5, %v526_v19  ;;  %537 = vrot.lane.b32.xlu0 %v1660_v28, %s1297_s1  ;;  %v529_v53 = vmax.f32 %v508_v30, %v525_v14 }
 0x22c   :  { %v1669_v0 = vmax.f32 %v489_v32, %v527_v33 }
 0x22d   :  { %v1671_v49 = vmax.f32 %v492_v42, %v530_v31  ;;  %v1678_v24 = vmax.f32 %v491_v20, %v529_v53 }
 0x22e   :  { %2091 = vst [vmem:[#allocation16_spill] sm:$0xff] %v1669_v0  ;;  %535 = vrot.lane.b32.xlu1 %v1669_v0, %s1297_s1 }
 0x22f   :  { %2092 = vst [vmem:[#allocation17_spill] sm:$0xff] %v1671_v49  ;;  %541 = vrot.lane.b32.xlu0 %v1671_v49, %s1297_s1  ;;  %2093 = vst [vmem:[#allocation18_spill] sm:$0xff] %v1678_v24 }
 0x232   :  { %539 = vrot.lane.b32.xlu1 %v1678_v24, %s1297_s1 }
 0x233   :  { %553 = vrot.lane.b32.xlu0 %v1660_v28, %s1298_s2 }
 0x236   :  { %551 = vrot.lane.b32.xlu1 %v1669_v0, %s1298_s2 }
 0x237   :  { %557 = vrot.lane.b32.xlu0 %v1671_v49, %s1298_s2 }
 0x23a   :  { %555 = vrot.lane.b32.xlu1 %v1678_v24, %s1298_s2 }
 0x23b   :  { %577 = vrot.lane.b32.xlu0 %v1660_v28, %s1299_s9 }
 0x23e   :  { %575 = vrot.lane.b32.xlu1 %v1669_v0, %s1299_s9 }
 0x23f   :  { %581 = vrot.lane.b32.xlu0 %v1671_v49, %s1299_s9 }
 0x242   :  { %579 = vrot.lane.b32.xlu1 %v1678_v24, %s1299_s9 }
 0x243   :  { %593 = vrot.lane.b32.xlu0 %v1660_v28, %s1300_s10 }
 0x246   :  { %591 = vrot.lane.b32.xlu1 %v1669_v0, %s1300_s10 }
 0x247   :  { %597 = vrot.lane.b32.xlu0 %v1671_v49, %s1300_s10 }
 0x24a   :  { %595 = vrot.lane.b32.xlu1 %v1678_v24, %s1300_s10 }
 0x29d   :  { %v538_v17 = vpop.permute.xlu0 %537 }
 0x2a0   :  { %v536_v27 = vpop.permute.xlu1 %535 }
 0x2a1   :  { %v542_v35 = vpop.permute.xlu0 %541  ;;  %v545_v51 = vsel %vm375_vm1, %v536_v27, %v538_v17 }
 0x2a2   :  { %v547_v42 = vadd.f32 %v545_v51, %v1454_v10  ;;  %v546_v31 = vsel %vm375_vm1, %v542_v35, %v536_v27 }
 0x2a4   :  { %v540_v23 = vpop.permute.xlu1 %539 }
 0x2a5   :  { %v554_v39 = vpop.permute.xlu0 %553  ;;  %v544_v37 = vsel %vm375_vm1, %v538_v17, %v540_v23  ;;  %v543_v53 = vsel %vm375_vm1, %v540_v23, %v542_v35 }
 0x2a6   :  { %v548_v32 = vadd.f32 %v544_v37, %v1457_v11  ;;  %v549_v27 = vadd.f32 %v543_v53, %v1415_v57 }
 0x2a8   :  { %v552_v40 = vpop.permute.xlu1 %551 }
 0x2a9   :  { %v558_v50 = vpop.permute.xlu0 %557  ;;  %v561_v38 = vsel %vm392_vm2, %v552_v40, %v554_v39 }
 0x2aa   :  { %v562_v7 = vsel %vm392_vm2, %v558_v50, %v552_v40  ;;  %v564_v5 = vadd.f32 %v561_v38, %v1423_v60 }
 0x2ab   :  { %v563_v14 = vadd.f32 %v562_v7, %v1429_v62  ;;  %v550_v7 = vadd.f32 %v546_v31, %v1418_v58 }
 0x2ac   :  { %v556_v6 = vpop.permute.xlu1 %555  ;;  %v568_v20 = vmax.f32 %v548_v32, %v564_v5 }
 0x2ad   :  { %v578_v41 = vpop.permute.xlu0 %577  ;;  %v559_v29 = vsel %vm392_vm2, %v556_v6, %v558_v50  ;;  %v560_v30 = vsel %vm392_vm2, %v554_v39, %v556_v6  ;;  %v567_v40 = vmax.f32 %v547_v42, %v563_v14 }
 0x2ae   :  { %v565_v38 = vadd.f32 %v560_v30, %v1426_v61  ;;  %v566_v50 = vadd.f32 %v559_v29, %v1432_v63 }
 0x2af   :  { %v571_v42 = vmax.f32 %v1669_v0, %v567_v40 }
 0x2b0   :  { %v576_v48 = vpop.permute.xlu1 %575  ;;  %v569_v31 = vmax.f32 %v549_v27, %v565_v38 }
 0x2b1   :  { %v582_v22 = vpop.permute.xlu0 %581  ;;  %v585_v39 = vsel %vm417_vm3, %v576_v48, %v578_v41 }
 0x2b2   :  { %v586_v37 = vsel %vm417_vm3, %v582_v22, %v576_v48  ;;  %v587_v32 = vadd.f32 %v585_v39, %v1436_v1  ;;  %v570_v48 = vmax.f32 %v550_v7, %v566_v50 }
 0x2b4   :  { %v580_v19 = vpop.permute.xlu1 %579  ;;  %v574_v50 = vmax.f32 %v1671_v49, %v570_v48 }
 0x2b5   :  { %v594_v33 = vpop.permute.xlu0 %593  ;;  %v584_v17 = vsel %vm417_vm3, %v578_v41, %v580_v19  ;;  %v572_v41 = vmax.f32 %v1660_v28, %v568_v20  ;;  %v583_v29 = vsel %vm417_vm3, %v580_v19, %v582_v22 }
 0x2b6   :  { %v588_v51 = vadd.f32 %v584_v17, %v1439_v2  ;;  %v589_v39 = vadd.f32 %v583_v29, %v1442_v4 }
 0x2b8   :  { %v592_v6 = vpop.permute.xlu1 %591 }
 0x2b9   :  { %v601_v35 = vsel %vm434_vm4, %v592_v6, %v594_v33  ;;  %v598_v23 = vpop.permute.xlu0 %597 }
 0x2ba   :  { %v604_v5 = vadd.f32 %v601_v35, %v1461_v12  ;;  %v602_v14 = vsel %vm434_vm4, %v598_v23, %v592_v6  ;;  %v590_v35 = vadd.f32 %v586_v37, %v1451_v9 }
 0x2bb   :  { %v603_v30 = vadd.f32 %v602_v14, %v1471_v16 }
 0x2bc   :  { %v608_v53 = vmax.f32 %v588_v51, %v604_v5  ;;  %v596_v17 = vpop.permute.xlu1 %595 }
 0x2bd   :  { %v607_v36 = vmax.f32 %v587_v32, %v603_v30  ;;  %v599_v6 = vsel %vm434_vm4, %v596_v17, %v598_v23  ;;  %v600_v20 = vsel %vm434_vm4, %v594_v33, %v596_v17  ;;  %v573_v23 = vmax.f32 %v1678_v24, %v569_v31 }
 0x2be   :  { %v612_v22 = vmax.f32 %v572_v41, %v608_v53  ;;  %v605_v19 = vadd.f32 %v600_v20, %v1468_v15  ;;  %v606_v40 = vadd.f32 %v599_v6, %v1477_v21 }
 0x2bf   :  { %v1756_v38 = vmax.f32 %v571_v42, %v607_v36 }
 0x2c0   :  { %v609_v7 = vmax.f32 %v589_v39, %v605_v19  ;;  %v610_v27 = vmax.f32 %v590_v35, %v606_v40  ;;  %617 = vrot.lane.b32.xlu0 %v612_v22, %s1301_s11 }
 0x2c1   :  { %615 = vrot.lane.b32.xlu1 %v1756_v38, %s1301_s11 }
 0x2c2   :  { %v1763_v33 = vmax.f32 %v574_v50, %v610_v27  ;;  %v1765_v37 = vmax.f32 %v573_v23, %v609_v7 }
 0x2c4   :  { %621 = vrot.lane.b32.xlu0 %v1763_v33, %s1301_s11 }
 0x2c5   :  { %619 = vrot.lane.b32.xlu1 %v1765_v37, %s1301_s11 }
 0x2c8   :  { %633 = vrot.lane.b32.xlu0 %v612_v22, %s1302_s12 }
 0x2c9   :  { %631 = vrot.lane.b32.xlu1 %v1756_v38, %s1302_s12 }
 0x2cc   :  { %637 = vrot.lane.b32.xlu0 %v1763_v33, %s1302_s12 }
 0x2cd   :  { %635 = vrot.lane.b32.xlu1 %v1765_v37, %s1302_s12 }
 0x2d0   :  { %657 = vrot.lane.b32.xlu0 %v612_v22, %s1303_s13 }
 0x2d1   :  { %655 = vrot.lane.b32.xlu1 %v1756_v38, %s1303_s13 }
 0x2d4   :  { %661 = vrot.lane.b32.xlu0 %v1763_v33, %s1303_s13 }
 0x2d5   :  { %659 = vrot.lane.b32.xlu1 %v1765_v37, %s1303_s13 }
 0x2d8   :  { %673 = vrot.lane.b32.xlu0 %v612_v22, %s1304_s14 }
 0x2d9   :  { %671 = vrot.lane.b32.xlu1 %v1756_v38, %s1304_s14 }
 0x2dc   :  { %677 = vrot.lane.b32.xlu0 %v1763_v33, %s1304_s14 }
 0x2dd   :  { %675 = vrot.lane.b32.xlu1 %v1765_v37, %s1304_s14 }
 0x332   :  { %v618_v36 = vpop.permute.xlu0 %617 }
 0x333   :  { %v616_v51 = vpop.permute.xlu1 %615 }
 0x334   :  { %v625_v40 = vsel %vm459_vm6, %v616_v51, %v618_v36 }
 0x336   :  { %v622_v5 = vpop.permute.xlu0 %621 }
 0x337   :  { %v620_v14 = vpop.permute.xlu1 %619  ;;  %v626_v50 = vsel %vm459_vm6, %v622_v5, %v616_v51 }
 0x338   :  { %v624_v53 = vsel %vm459_vm6, %v618_v36, %v620_v14  ;;  %v623_v7 = vsel %vm459_vm6, %v620_v14, %v622_v5  ;;  %v627_v36 = vadd.f32 %v625_v40, %v1568_v47  ;;  %v630_v51 = vadd.f32 %v626_v50, %v1575_v55 }
 0x339   :  { %v628_v39 = vadd.f32 %v624_v53, %v1572_v54  ;;  %v629_v14 = vadd.f32 %v623_v7, %v1578_v59 }
 0x33a   :  { %v634_v41 = vpop.permute.xlu0 %633 }
 0x33b   :  { %v632_v32 = vpop.permute.xlu1 %631 }
 0x33c   :  { %v641_v31 = vsel %vm476_vm5, %v632_v32, %v634_v41 }
 0x33d   :  { %v644_v17 = vadd.f32 %v641_v31, %v1562_v45 }
 0x33e   :  { %v638_v29 = vpop.permute.xlu0 %637 }
 0x33f   :  { %v636_v30 = vpop.permute.xlu1 %635  ;;  %v642_v6 = vsel %vm476_vm5, %v638_v29, %v632_v32  ;;  %v648_v27 = vmax.f32 %v628_v39, %v644_v17 }
 0x340   :  { %v639_v19 = vsel %vm476_vm5, %v636_v30, %v638_v29  ;;  %v643_v23 = vadd.f32 %v642_v6, %v1585_v13  ;;  %v640_v53 = vsel %vm476_vm5, %v634_v41, %v636_v30 }
 0x341   :  { %v646_v29 = vadd.f32 %v639_v19, %v1591_v3  ;;  %v652_v41 = vmax.f32 %v612_v22, %v648_v27  ;;  %v645_v19 = vadd.f32 %v640_v53, %v1588_v56 }
 0x342   :  { %v658_v42 = vpop.permute.xlu0 %657  ;;  %v647_v30 = vmax.f32 %v627_v36, %v643_v23 }
 0x343   :  { %v656_v48 = vpop.permute.xlu1 %655  ;;  %v650_v49 = vmax.f32 %v630_v51, %v646_v29  ;;  %v649_v29 = vmax.f32 %v629_v14, %v645_v19 }
 0x344   :  { %v665_v17 = vsel %vm501_vm7, %v656_v48, %v658_v42 }
 0x346   :  { %v662_v35 = vpop.permute.xlu0 %661 }
 0x347   :  { %v660_v20 = vpop.permute.xlu1 %659  ;;  %v666_v40 = vsel %vm501_vm7, %v662_v35, %v656_v48 }
 0x348   :  { %v664_v32 = vsel %vm501_vm7, %v658_v42, %v660_v20  ;;  %v663_v0 = vsel %vm501_vm7, %v660_v20, %v662_v35  ;;  %v670_v23 = vadd.f32 %v666_v40, %v1600_v44 }
 0x349   :  { %v668_v6 = vadd.f32 %v664_v32, %v1606_v25  ;;  %v667_v32 = vadd.f32 %v665_v17, %v1596_v18  ;;  %v669_v36 = vadd.f32 %v663_v0, %v1609_v26 }
 0x34a   :  { %v674_v31 = vpop.permute.xlu0 %673 }
 0x34b   :  { %v672_v24 = vpop.permute.xlu1 %671 }
 0x34c   :  { %v681_v5 = vsel %vm518_vm8, %v672_v24, %v674_v31 }
 0x34d   :  { %v684_v39 = vadd.f32 %v681_v5, %v1616_v43  ;;  %v654_v5 = vmax.f32 %v1763_v33, %v650_v49 }
 0x34e   :  { %v678_v50 = vpop.permute.xlu0 %677 }
 0x34f   :  { %v688_v7 = vmax.f32 %v668_v6, %v684_v39  ;;  %v682_v42 = vsel %vm518_vm8, %v678_v50, %v672_v24  ;;  %v676_v28 = vpop.permute.xlu1 %675  ;;  %v651_v24 = vmax.f32 %v1756_v38, %v647_v30  ;;  %v653_v39 = vmax.f32 %v1765_v37, %v649_v29 }
 0x350   :  { %v683_v22 = vadd.f32 %v682_v42, %v1628_v52  ;;  %v679_v27 = vsel %vm518_vm8, %v676_v28, %v678_v50  ;;  %v680_v48 = vsel %vm518_vm8, %v674_v31, %v676_v28 }
 0x351   :  { %v1837_v53 = vmax.f32 %v652_v41, %v688_v7  ;;  %v685_v35 = vadd.f32 %v680_v48, %v1631_v34  ;;  %v686_v20 = vadd.f32 %v679_v27, %v1638_v8 }
 0x352   :  { %v687_v51 = vmax.f32 %v667_v32, %v683_v22 }
 0x353   :  { %v690_v17 = vmax.f32 %v670_v23, %v686_v20  ;;  %697 = vrot.lane.b32.xlu0 %v1837_v53, %s1297_s1  ;;  %v689_v31 = vmax.f32 %v669_v36, %v685_v35 }
 0x354   :  { %v1846_v28 = vmax.f32 %v651_v24, %v687_v51 }
 0x355   :  { %v1848_v6 = vmax.f32 %v654_v5, %v690_v17  ;;  %v1855_v0 = vmax.f32 %v653_v39, %v689_v31 }
 0x356   :  { %695 = vrot.lane.b32.xlu1 %v1846_v28, %s1297_s1 }
 0x357   :  { %701 = vrot.lane.b32.xlu0 %v1848_v6, %s1297_s1 }
 0x35a   :  { %699 = vrot.lane.b32.xlu1 %v1855_v0, %s1297_s1 }
 0x35b   :  { %713 = vrot.lane.b32.xlu0 %v1837_v53, %s1298_s2 }
 0x35e   :  { %711 = vrot.lane.b32.xlu1 %v1846_v28, %s1298_s2 }
 0x35f   :  { %717 = vrot.lane.b32.xlu0 %v1848_v6, %s1298_s2 }
 0x362   :  { %715 = vrot.lane.b32.xlu1 %v1855_v0, %s1298_s2 }
 0x363   :  { %737 = vrot.lane.b32.xlu0 %v1837_v53, %s1299_s9 }
 0x366   :  { %735 = vrot.lane.b32.xlu1 %v1846_v28, %s1299_s9 }
 0x367   :  { %741 = vrot.lane.b32.xlu0 %v1848_v6, %s1299_s9 }
 0x36a   :  { %739 = vrot.lane.b32.xlu1 %v1855_v0, %s1299_s9 }
 0x36b   :  { %753 = vrot.lane.b32.xlu0 %v1837_v53, %s1300_s10 }
 0x36e   :  { %751 = vrot.lane.b32.xlu1 %v1846_v28, %s1300_s10 }
 0x36f   :  { %757 = vrot.lane.b32.xlu0 %v1848_v6, %s1300_s10 }
 0x372   :  { %755 = vrot.lane.b32.xlu1 %v1855_v0, %s1300_s10 }
 0x3c5   :  { %v698_v49 = vpop.permute.xlu0 %697 }
 0x3c8   :  { %v696_v38 = vpop.permute.xlu1 %695 }
 0x3c9   :  { %v702_v33 = vpop.permute.xlu0 %701  ;;  %v705_v27 = vsel %vm375_vm1, %v696_v38, %v698_v49 }
 0x3ca   :  { %v707_v51 = vadd.f32 %v705_v27, %v1454_v10  ;;  %v706_v5 = vsel %vm375_vm1, %v702_v33, %v696_v38 }
 0x3cb   :  { %v710_v10 = vadd.f32 %v706_v5, %v1418_v58 }
 0x3cc   :  { %v700_v37 = vpop.permute.xlu1 %699 }
 0x3cd   :  { %v714_v14 = vpop.permute.xlu0 %713  ;;  %v704_v22 = vsel %vm375_vm1, %v698_v49, %v700_v37 }
 0x3ce   :  { %v708_v20 = vadd.f32 %v704_v22, %v1457_v11 }
 0x3d0   :  { %v712_v41 = vpop.permute.xlu1 %711 }
 0x3d1   :  { %v718_v30 = vpop.permute.xlu0 %717  ;;  %v721_v50 = vsel %vm392_vm2, %v712_v41, %v714_v14 }
 0x3d2   :  { %v722_v42 = vsel %vm392_vm2, %v718_v30, %v712_v41  ;;  %v724_v48 = vadd.f32 %v721_v50, %v1423_v60  ;;  %v703_v60 = vsel %vm375_vm1, %v700_v37, %v702_v33 }
 0x3d3   :  { %v723_v23 = vadd.f32 %v722_v42, %v1429_v62  ;;  %v709_v38 = vadd.f32 %v703_v60, %v1415_v57 }
 0x3d4   :  { %v716_v19 = vpop.permute.xlu1 %715  ;;  %v728_v17 = vmax.f32 %v708_v20, %v724_v48 }
 0x3d5   :  { %v738_v40 = vpop.permute.xlu0 %737  ;;  %v719_v24 = vsel %vm392_vm2, %v716_v19, %v718_v30  ;;  %v720_v29 = vsel %vm392_vm2, %v714_v14, %v716_v19  ;;  %v727_v11 = vmax.f32 %v707_v51, %v723_v23 }
 0x3d6   :  { %v725_v31 = vadd.f32 %v720_v29, %v1426_v61  ;;  %v726_v39 = vadd.f32 %v719_v24, %v1432_v63  ;;  %v732_v19 = vmax.f32 %v1837_v53, %v728_v17 }
 0x3d7   :  { %v731_v50 = vmax.f32 %v1846_v28, %v727_v11 }
 0x3d8   :  { %v736_v7 = vpop.permute.xlu1 %735  ;;  %v729_v42 = vmax.f32 %v709_v38, %v725_v31 }
 0x3d9   :  { %v742_v32 = vpop.permute.xlu0 %741  ;;  %v745_v49 = vsel %vm417_vm3, %v736_v7, %v738_v40 }
 0x3da   :  { %v746_v41 = vsel %vm417_vm3, %v742_v32, %v736_v7  ;;  %v747_v58 = vadd.f32 %v745_v49, %v1436_v1  ;;  %v730_v7 = vmax.f32 %v710_v10, %v726_v39  ;;  %v733_v51 = vmax.f32 %v1855_v0, %v729_v42 }
 0x3dc   :  { %v740_v35 = vpop.permute.xlu1 %739  ;;  %v734_v24 = vmax.f32 %v1848_v6, %v730_v7 }
 0x3dd   :  { %v754_v36 = vpop.permute.xlu0 %753  ;;  %v744_v62 = vsel %vm417_vm3, %v738_v40, %v740_v35  ;;  %v743_v57 = vsel %vm417_vm3, %v740_v35, %v742_v32 }
 0x3de   :  { %v748_v30 = vadd.f32 %v744_v62, %v1439_v2  ;;  %v749_v23 = vadd.f32 %v743_v57, %v1442_v4 }
 0x3e0   :  { %v752_v14 = vpop.permute.xlu1 %751 }
 0x3e1   :  { %v761_v33 = vsel %vm434_vm4, %v752_v14, %v754_v36  ;;  %v758_v37 = vpop.permute.xlu0 %757 }
 0x3e2   :  { %v764_v61 = vadd.f32 %v761_v33, %v1461_v12  ;;  %v762_v63 = vsel %vm434_vm4, %v758_v37, %v752_v14  ;;  %v750_v12 = vadd.f32 %v746_v41, %v1451_v9 }
 0x3e3   :  { %v763_v40 = vadd.f32 %v762_v63, %v1471_v16 }
 0x3e4   :  { %v768_v22 = vmax.f32 %v748_v30, %v764_v61  ;;  %v756_v2 = vpop.permute.xlu1 %755 }
 0x3e5   :  { %v767_v27 = vmax.f32 %v747_v58, %v763_v40  ;;  %v759_v48 = vsel %vm434_vm4, %v756_v2, %v758_v37  ;;  %v760_v1 = vsel %vm434_vm4, %v754_v36, %v756_v2 }
 0x3e6   :  { %v1931_v32 = vmax.f32 %v732_v19, %v768_v22  ;;  %v765_v16 = vadd.f32 %v760_v1, %v1468_v15  ;;  %v766_v35 = vadd.f32 %v759_v48, %v1477_v21  ;;  %v891_v15 = vld [vmem:[%s2073_s4 + $0x8] sm:$0xff]  ;;  %v890_v21 = vld [vmem:[%s2073_s4] sm:$0xff] }
 0x3e7   :  { %v1935_v20 = vmax.f32 %v731_v50, %v767_v27 }
 0x3e8   :  { %v769_v9 = vmax.f32 %v749_v23, %v765_v16  ;;  %v770_v29 = vmax.f32 %v750_v12, %v766_v35  ;;  %777 = vrot.lane.b32.xlu0 %v1931_v32, %s1301_s11 }
 0x3e9   :  { %775 = vrot.lane.b32.xlu1 %v1935_v20, %s1301_s11 }
 0x3ea   :  { %v1943_v4 = vmax.f32 %v734_v24, %v770_v29  ;;  %v1945_v36 = vmax.f32 %v733_v51, %v769_v9 }
 0x3ec   :  { %781 = vrot.lane.b32.xlu0 %v1943_v4, %s1301_s11 }
 0x3ed   :  { %779 = vrot.lane.b32.xlu1 %v1945_v36, %s1301_s11 }
 0x3f0   :  { %793 = vrot.lane.b32.xlu0 %v1931_v32, %s1302_s12 }
 0x3f1   :  { %791 = vrot.lane.b32.xlu1 %v1935_v20, %s1302_s12 }
 0x3f4   :  { %797 = vrot.lane.b32.xlu0 %v1943_v4, %s1302_s12 }
 0x3f5   :  { %795 = vrot.lane.b32.xlu1 %v1945_v36, %s1302_s12 }
 0x3f8   :  { %817 = vrot.lane.b32.xlu0 %v1931_v32, %s1303_s13 }
 0x3f9   :  { %815 = vrot.lane.b32.xlu1 %v1935_v20, %s1303_s13 }
 0x3fc   :  { %821 = vrot.lane.b32.xlu0 %v1943_v4, %s1303_s13 }
 0x3fd   :  { %819 = vrot.lane.b32.xlu1 %v1945_v36, %s1303_s13 }
 0x400   :  { %833 = vrot.lane.b32.xlu0 %v1931_v32, %s1304_s14 }
 0x401   :  { %831 = vrot.lane.b32.xlu1 %v1935_v20, %s1304_s14 }
 0x404   :  { %837 = vrot.lane.b32.xlu0 %v1943_v4, %s1304_s14 }
 0x405   :  { %835 = vrot.lane.b32.xlu1 %v1945_v36, %s1304_s14 }
 0x408   :  { %899 = vperm.xlu0 %1177, %v891_v15  }
 0x409   :  { %894 = vperm.xlu1 %1178, %v890_v21  }
 0x45a   :  { %v778_v5 = vpop.permute.xlu0 %777 }
 0x45b   :  { %v776_v60 = vpop.permute.xlu1 %775 }
 0x45c   :  { %v785_v57 = vsel %vm459_vm6, %v776_v60, %v778_v5 }
 0x45d   :  { %v787_v27 = vadd.f32 %v785_v57, %v1568_v47 }
 0x45e   :  { %v782_v17 = vpop.permute.xlu0 %781 }
 0x45f   :  { %v780_v62 = vpop.permute.xlu1 %779  ;;  %v786_v40 = vsel %vm459_vm6, %v782_v17, %v776_v60 }
 0x460   :  { %v784_v33 = vsel %vm459_vm6, %v778_v5, %v780_v62 }
 0x461   :  { %v788_v19 = vadd.f32 %v784_v33, %v1572_v54 }
 0x462   :  { %v794_v11 = vpop.permute.xlu0 %793 }
 0x463   :  { %v792_v31 = vpop.permute.xlu1 %791 }
 0x464   :  { %v801_v10 = vsel %vm476_vm5, %v792_v31, %v794_v11 }
 0x465   :  { %v804_v37 = vadd.f32 %v801_v10, %v1562_v45  ;;  %v783_v45 = vsel %vm459_vm6, %v780_v62, %v782_v17 }
 0x466   :  { %v798_v39 = vpop.permute.xlu0 %797  ;;  %v789_v48 = vadd.f32 %v783_v45, %v1578_v59 }
 0x467   :  { %v796_v49 = vpop.permute.xlu1 %795  ;;  %v802_v30 = vsel %vm476_vm5, %v798_v39, %v792_v31  ;;  %v808_v50 = vmax.f32 %v788_v19, %v804_v37 }
 0x468   :  { %v800_v61 = vsel %vm476_vm5, %v794_v11, %v796_v49  ;;  %v799_v58 = vsel %vm476_vm5, %v796_v49, %v798_v39  ;;  %v803_v42 = vadd.f32 %v802_v30, %v1585_v13  ;;  %v790_v13 = vadd.f32 %v786_v40, %v1575_v55  ;;  %v2096_v30 = vld [vmem:[#allocation17_spill] sm:$0xff]  ;;  %v888_v40 = vld [vmem:[%s2072_s3] sm:$0xff] }
 0x469   :  { %v805_v7 = vadd.f32 %v800_v61, %v1588_v56  ;;  %v806_v2 = vadd.f32 %v799_v58, %v1591_v3  ;;  %v812_v35 = vmax.f32 %v1931_v32, %v808_v50  ;;  %v2098_v58 = vld [vmem:[#allocation14_spill] sm:$0xff]  ;;  %v2099_v50 = vld [vmem:[#allocation11_spill] sm:$0xff] }
 0x46a   :  { %v818_v14 = vpop.permute.xlu0 %817  ;;  %v807_v47 = vmax.f32 %v787_v27, %v803_v42  ;;  %v2100_v42 = vld [vmem:[#allocation13_spill] sm:$0xff] }
 0x46b   :  { %v816_v38 = vpop.permute.xlu1 %815  ;;  %v809_v24 = vmax.f32 %v789_v48, %v805_v7  ;;  %v810_v29 = vmax.f32 %v790_v13, %v806_v2 }
 0x46c   :  { %v825_v1 = vsel %vm501_vm7, %v816_v38, %v818_v14  ;;  %v811_v11 = vmax.f32 %v1935_v20, %v807_v47  ;;  %v2095_v20 = vld [vmem:[#allocation16_spill] sm:$0xff] }
 0x46d   :  { %v827_v51 = vadd.f32 %v825_v1, %v1596_v18  ;;  %v813_v31 = vmax.f32 %v1945_v36, %v809_v24  ;;  %v859_v37 = vrot.slane %v2095_v20, 4 }
 0x46e   :  { %v822_v41 = vpop.permute.xlu0 %821 }
 0x46f   :  { %v820_v63 = vpop.permute.xlu1 %819  ;;  %v826_v56 = vsel %vm501_vm7, %v822_v41, %v816_v38 }
 0x470   :  { %v824_v54 = vsel %vm501_vm7, %v818_v14, %v820_v63  ;;  %v823_v59 = vsel %vm501_vm7, %v820_v63, %v822_v41  ;;  %v2097_v63 = vld [vmem:[#allocation18_spill] sm:$0xff] }
 0x471   :  { %v828_v16 = vadd.f32 %v824_v54, %v1606_v25  ;;  %v830_v25 = vadd.f32 %v826_v56, %v1600_v44  ;;  %v829_v60 = vadd.f32 %v823_v59, %v1609_v26  ;;  %v861_v19 = vrot.slane %v2097_v63, 4 }
 0x472   :  { %v834_v22 = vpop.permute.xlu0 %833 }
 0x473   :  { %v832_v12 = vpop.permute.xlu1 %831 }
 0x474   :  { %v841_v23 = vsel %vm518_vm8, %v832_v12, %v834_v22 }
 0x475   :  { %v844_v3 = vadd.f32 %v841_v23, %v1616_v43 }
 0x476   :  { %v838_v9 = vpop.permute.xlu0 %837 }
 0x477   :  { %v848_v15 = vmax.f32 %v828_v16, %v844_v3  ;;  %v842_v55 = vsel %vm518_vm8, %v838_v9, %v832_v12  ;;  %v836_v21 = vpop.permute.xlu1 %835 }
 0x478   :  { %v843_v43 = vadd.f32 %v842_v55, %v1628_v52  ;;  %v839_v32 = vsel %vm518_vm8, %v836_v21, %v838_v9  ;;  %v840_v5 = vsel %vm518_vm8, %v834_v22, %v836_v21  ;;  %v814_v52 = vmax.f32 %v1943_v4, %v810_v29 }
 0x479   :  { %v845_v17 = vadd.f32 %v840_v5, %v1631_v34  ;;  %v846_v18 = vadd.f32 %v839_v32, %v1638_v8  ;;  %v852_v62 = vmax.f32 %v812_v35, %v848_v15  ;;  %v2094_v34 = vld [vmem:[#allocation15_spill] sm:$0xff]  ;;  %v862_v4 = vrot.slane %v2096_v30, 4 }
 0x47a   :  { %v847_v44 = vmax.f32 %v827_v51, %v843_v43  ;;  %v860_v38 = vrot.slane %v2094_v34, 4  ;;  %v2102_v22 = vmov 0.0  }
 0x47b   :  { %v849_v39 = vmax.f32 %v829_v60, %v845_v17  ;;  %v850_v49 = vmax.f32 %v830_v25, %v846_v18  ;;  %v872_v14 = vrot.slane %v852_v62, 4  ;;  %v883_v7 = vsel %vm879_vm9, %v2100_v42, %v862_v4 }
 0x47c   :  { %v851_v10 = vmax.f32 %v811_v11, %v847_v44 }
 0x47d   :  { %v853_v46 = vmax.f32 %v813_v31, %v849_v39  ;;  %v885_v26 = vsel %vm879_vm9, %v1837_v53, %v872_v14  ;;  %v854_v8 = vmax.f32 %v814_v52, %v850_v49  ;;  %v881_v53 = vsel %vm879_vm9, %v2098_v58, %v860_v38 }
 0x47e   :  { %v871_v33 = vrot.slane %v851_v10, 4  ;;  %937 = vmatprep.subr.mxu0 %v885_v26 }
 0x47f   :  { %v873_v36 = vrot.slane %v853_v46, 4  ;;  %v874_v41 = vrot.slane %v854_v8, 4 }
 0x480   :  { %v884_v61 = vsel %vm879_vm9, %v1846_v28, %v871_v33  ;;  %v880_v28 = vsel %vm879_vm9, %v2099_v50, %v859_v37 }
 0x481   :  { %938 = vmatpush1.msra.mxu0 %v884_v61  ;;  %v887_v57 = vsel %vm879_vm9, %v1848_v6, %v874_v41  ;;  %v886_v45 = vsel %vm879_vm9, %v1855_v0, %v873_v36  ;;  %v2101_v6 = vld [vmem:[#allocation12_spill] sm:$0xff] }
 0x482   :  { %939 = vmatprep.subr.mxu0 %v881_v53  ;;  %1014 = vmatprep.subr.mxu1 %v887_v57  ;;  %v882_v54 = vsel %vm879_vm9, %v2101_v6, %v861_v19  ;;  %v889_v0 = vld [vmem:[%s2072_s3 + $0x8] sm:$0xff]  ;;  %s1305_s3 = smov [#allocation7]  }
 0x483   :  { %940 = vmatpush1.msra.mxu0 %v880_v28  ;;  %1015 = vmatpush1.msra.mxu1 %v886_v45  ;;  %v900_v23 = vpop.permute.xlu0 %899  ;;  %s1132_s22 = sshll.u32 %s1305_s3, 4  ;;  %s1133_s22 = int_to_ptr.vmem [resolvable:$true] %s1132_s22 }
 0x484   :  { %1151 = vmatmul.mubr.msk.f32.vlgmr.msra.gmra.mxu0 %vm902_vm10, %v888_v40  ;;  %1016 = vmatprep.subr.mxu1 %v883_v7  ;;  %v895_v2 = vpop.permute.xlu1 %894  ;;  %s1267_s23 = scalar_lea.vmem %s1133_s22, 1024  ;;  %p1272_p11 = scmp.lt.s32.totalorder %s1133_s22, %s1133_s22 }
 0x485   :  { %1017 = vmatpush1.msra.mxu1 %v882_v54  ;;  %979 = vmatprep.mubr.f32.mxu0 %v2102_v22  ;;  %p1268_p10 = scmp.ne.s32.totalorder %s1133_s22, %s1267_s23  ;;  %p1273_p12 = scmp.lt.s32.totalorder %s1267_s23, %s1267_s23 }
 0x486   :  { %1153 = vmatmul.mubr.msk.f32.vlgmr.msra.gmra.mxu1 %vm902_vm10, %v888_v40 }
 0x487   :  { %1056 = vmatprep.mubr.f32.mxu1 %v2102_v22  ;;  %p1274_p13 = por %p1273_p12, %p1272_p11 }
 0x488   :  { %1152 = vmatmul.mubr.msk.f32.gmra.mxu0 %vm902_vm10, %v889_v0 }
 0x489   :  { %p1275_p0 = pnand %p1274_p13, %p1268_p10 }
 0x48a   :  { %1154 = vmatmul.mubr.msk.f32.gmra.mxu1 %vm902_vm10, %v889_v0 }
 0x544   :  { %v975_v12 = vpop.f32.mrf.mxu0 }
 0x545   :  { %v976_v27 = vadd.f32 %v975_v12, %v895_v2 }
 0x546   :  { %v977_v48 = vpop.f32.mrf.mxu0  ;;  %v1052_v1 = vpop.f32.mrf.mxu1 }
 0x547   :  { %v1155_v13 = vmul.f32 -1.442695, %v976_v27  ;;  %v978_v56 = vadd.f32 %v977_v48, %v895_v2  ;;  %v1053_v16 = vadd.f32 %v1052_v1, %v895_v2 }
 0x548   :  { %v981_v3 = vpop.f32.mrf.mxu0  ;;  %v1054_v35 = vpop.f32.mrf.mxu1 }
 0x549   :  { %1195 = vpow2.f32 %v1155_v13  ;;  %v1156_v47 = vmul.f32 -1.442695, %v978_v56  ;;  %v1157_v24 = vmul.f32 -1.442695, %v1053_v16  ;;  %v982_v59 = vadd.f32 %v981_v3, %v900_v23 }
 0x54a   :  { %v1055_v9 = vadd.f32 %v1054_v35, %v895_v2  ;;  %v983_v29 = vpop.f32.mrf.mxu0  ;;  %v1058_v51 = vpop.f32.mrf.mxu1 }
 0x54b   :  { %1197 = vpow2.f32 %v1156_v47  ;;  %v1159_v15 = vmul.f32 -1.442695, %v982_v59  ;;  %v984_v55 = vadd.f32 %v983_v29, %v900_v23  ;;  %v1059_v21 = vadd.f32 %v1058_v51, %v900_v23 }
 0x54c   :  { %1199 = vpow2.f32 %v1157_v24  ;;  %v1158_v25 = vmul.f32 -1.442695, %v1055_v9  ;;  %v1060_v43 = vpop.f32.mrf.mxu1 }
 0x54d   :  { %1201 = vpow2.f32 %v1159_v15  ;;  %v1160_v32 = vmul.f32 -1.442695, %v984_v55  ;;  %v1161_v5 = vmul.f32 -1.442695, %v1059_v21  ;;  %v1061_v60 = vadd.f32 %v1060_v43, %v900_v23 }
 0x54e   :  { %1203 = vpow2.f32 %v1158_v25 }
 0x54f   :  { %1205 = vpow2.f32 %v1160_v32  ;;  %v1162_v17 = vmul.f32 -1.442695, %v1061_v60 }
 0x550   :  { %1207 = vpow2.f32 %v1161_v5 }
 0x551   :  { %1209 = vpow2.f32 %v1162_v17 }
 0x556   :  { %v1196_v18 = vpop.eup %1195 }
 0x557   :  { %v1087_v62 = vadd.f32 1.0, %v1196_v18 }
 0x558   :  { %v1198_v11 = vpop.eup %1197 }
 0x559   :  { %v1200_v31 = vpop.eup %1199  ;;  %1211 = vrcp.f32 %v1087_v62  ;;  %v1088_v44 = vadd.f32 1.0, %v1198_v11 }
 0x55a   :  { %v1202_v52 = vpop.eup %1201  ;;  %v1089_v39 = vadd.f32 1.0, %v1200_v31 }
 0x55b   :  { %v1204_v49 = vpop.eup %1203  ;;  %1213 = vrcp.f32 %v1088_v44  ;;  %v1091_v14 = vadd.f32 1.0, %v1202_v52 }
 0x55c   :  { %v1206_v10 = vpop.eup %1205  ;;  %1215 = vrcp.f32 %v1089_v39  ;;  %v1090_v46 = vadd.f32 1.0, %v1204_v49 }
 0x55d   :  { %v1208_v26 = vpop.eup %1207  ;;  %1217 = vrcp.f32 %v1091_v14  ;;  %v1092_v34 = vadd.f32 1.0, %v1206_v10 }
 0x55e   :  { %v1210_v38 = vpop.eup %1209  ;;  %1219 = vrcp.f32 %v1090_v46  ;;  %v1093_v8 = vadd.f32 1.0, %v1208_v26 }
 0x55f   :  { %1221 = vrcp.f32 %v1092_v34  ;;  %v1094_v33 = vadd.f32 1.0, %v1210_v38 }
 0x560   :  { %1223 = vrcp.f32 %v1093_v8 }
 0x561   :  { %1225 = vrcp.f32 %v1094_v33 }
 0x566   :  { %v1212_v20 = vpop.eup %1211 }
 0x567   :  { %v1111_v37 = vmul.f32 %v1212_v20, %v976_v27 }
 0x568   :  { %v1214_v36 = vpop.eup %1213 }
 0x569   :  { %v1216_v41 = vpop.eup %1215  ;;  %1119 = vst [vmem:[#allocation7] sm:$0xff] %v1111_v37  ;;  %v1112_v30 = vmul.f32 %v1214_v36, %v978_v56 }
 0x56a   :  { %v1218_v4 = vpop.eup %1217  ;;  %v1113_v61 = vmul.f32 %v1216_v41, %v1053_v16 }
 0x56b   :  { %v1220_v63 = vpop.eup %1219  ;;  %1120 = vst [vmem:[#allocation7 + $0x8] sm:$0xff] %v1112_v30  ;;  %v1115_v19 = vmul.f32 %v1218_v4, %v982_v59 }
 0x56c   :  { %v1222_v58 = vpop.eup %1221  ;;  %1121 = vst [vmem:[#allocation7 + $0x10] sm:$0xff] %v1113_v61  ;;  %v1114_v53 = vmul.f32 %v1220_v63, %v1055_v9 }
 0x56d   :  { %v1224_v57 = vpop.eup %1223  ;;  %1123 = vst [vmem:[#allocation7 + $0x20] sm:$0xff] %v1115_v19  ;;  %v1116_v40 = vmul.f32 %v1222_v58, %v984_v55 }
 0x56e   :  { %v1226_v45 = vpop.eup %1225  ;;  %1122 = vst [vmem:[#allocation7 + $0x18] sm:$0xff] %v1114_v53  ;;  %v1117_v50 = vmul.f32 %v1224_v57, %v1059_v21 }
 0x56f   :  { %1124 = vst [vmem:[#allocation7 + $0x28] sm:$0xff] %v1116_v40  ;;  %v1118_v28 = vmul.f32 %v1226_v45, %v1061_v60 }
 0x570   :  { %1125 = vst [vmem:[#allocation7 + $0x30] sm:$0xff] %v1117_v50 }
 0x571   :  { %1126 = vst [vmem:[#allocation7 + $0x38] sm:$0xff] %v1118_v28 }
 0x572   :  { %1278 = shalt.err (!%p1275_p0)
}
 0x573   :  { %s1306_s24 = smov 512  }
 0x574   :  { %1138 = dma.vmem_to_hbm [thread:$0]  %s1133_s22, 1024, %s2075_s6, [#allocation4], %s1306_s24, %s1306_s24, %s1304_s14  }
 0x575   :  { %1291 = dma.done.wait [#allocation4], 1024  }
 0x576   :  { %1292 = vsyncadd [#allocation4], 4294966272 }
 0x577   :  { %1142 = vsyncpa [#allocation3], 1 }
 0x578   :  { %1143 = vsyncpa [#allocation6], 1 }
 0x579   :  { %1144 = vsyncpa [#allocation4], 1 }

</bundles_post_ra>
